<compile_context>
chip_gen: v6e
topology: v6e:2x2x1
jax: 0.10.0
libtpu: 0.0.40
codegen_flags: <defaults>
</compile_context>

<pallas_src>
import jax
import jax.numpy as jnp
from jax.experimental import pallas as pl
from jax.experimental.pallas import tpu as pltpu
import numpy as np


def erin_kernel(x_ref, w_ih_ref, w_hh_ref, b_ref, fc_w_ref, fc_b_ref, out_ref):
    # x_ref:    (T, B, D)   time-major input
    # w_ih_ref: (4, D, H)   gate-split input->hidden weights (i, f, g, o)
    # w_hh_ref: (4, H, H)   gate-split hidden->hidden weights
    # b_ref:    (4, 1, H)   gate-split combined bias (b_ih + b_hh)
    # fc_w_ref: (T, H, R)   fc weight laid out so logits = sum_t h_t @ fc_w[t]
    # fc_b_ref: (1, R)
    # out_ref:  (B, R)      softmax output
    T, B, _ = x_ref.shape
    H = w_hh_ref.shape[-1]
    R = out_ref.shape[-1]

    # Load the small weights once; leading-axis indices only (whole tiles).
    w_ih = [w_ih_ref[k] for k in range(4)]     # each (D, H)
    w_hh = [w_hh_ref[k] for k in range(4)]     # each (H, H)
    b = [b_ref[k] for k in range(4)]           # each (1, H)

    # --- Input projection for every (gate, timestep): off the serial path. ---
    # gx[k][t] is (B, H).  x_ref[t] is a leading-axis tile index and the gate
    # split is by construction (pre-split weights), so nothing below slices
    # lanes or sublanes.  PyTorch gate order: i, f, g, o.
    gx = [[jnp.dot(x_ref[t], w_ih[k], preferred_element_type=jnp.float32) + b[k]
           for t in range(T)]
          for k in range(4)]

    # --- Recurrence: state carried in vregs, fully unrolled (static T). ------
    # TODO(synk): on v5e/v6e the serial h @ W_hh could be re-expressed as VPU
    # multiply-adds (stride-0 broadcasts of W_hh rows) to take the MXU FIFO
    # round trip off the critical path; kept on the MXU here for simplicity.
    h = jnp.zeros((B, H), jnp.float32)
    c = jnp.zeros((B, H), jnp.float32)
    logits = jnp.zeros((B, R), jnp.float32)
    for t in range(T):
        i_g = jax.nn.sigmoid(
            gx[0][t] + jnp.dot(h, w_hh[0], preferred_element_type=jnp.float32))
        f_g = jax.nn.sigmoid(
            gx[1][t] + jnp.dot(h, w_hh[1], preferred_element_type=jnp.float32))
        g_g = jnp.tanh(
            gx[2][t] + jnp.dot(h, w_hh[2], preferred_element_type=jnp.float32))
        o_g = jax.nn.sigmoid(
            gx[3][t] + jnp.dot(h, w_hh[3], preferred_element_type=jnp.float32))
        c = f_g * c + i_g * g_g
        h = o_g * jnp.tanh(c)
        # FC folded into the recurrence (replaces hs concat + post-loop matmul).
        logits = logits + jnp.dot(h, fc_w_ref[t],
                                  preferred_element_type=jnp.float32)

    logits = logits + fc_b_ref[...]

    # --- Softmax over relations (max-subtracted); reciprocal on the EUP. -----
    m = jnp.max(logits, axis=1, keepdims=True)
    e = jnp.exp(logits - m)
    inv = pl.reciprocal(jnp.sum(e, axis=1, keepdims=True), approx=True)
    out_ref[...] = (e * inv).astype(out_ref.dtype)


def prepare_params(w_ih, w_hh, b_ih, b_hh, fc_w, fc_b):
    """One-time weight layout prep; run once at load time, outside the hot jit."""
    four_h = w_ih.shape[0]
    H = four_h // 4
    R, TH = fc_w.shape
    T = TH // H
    # Gate-split (PyTorch order i, f, g, o), pre-transposed for `x @ W`.
    w_ih_g = jnp.transpose(w_ih.reshape(4, H, -1), (0, 2, 1)).astype(jnp.float32)  # (4, D, H)
    w_hh_g = jnp.transpose(w_hh.reshape(4, H, H), (0, 2, 1)).astype(jnp.float32)   # (4, H, H)
    b_g = (b_ih + b_hh).reshape(4, 1, H).astype(jnp.float32)                       # (4, 1, H)
    # fc folded into the recurrence: flatten(lstm_out,1) @ fc_w.T == sum_t h_t @ fc_w_t[t]
    fc_w_t = jnp.transpose(fc_w).reshape(T, H, R).astype(jnp.float32)              # (T, H, R)
    fc_b2 = fc_b.reshape(1, R).astype(jnp.float32)                                 # (1, R)
    return w_ih_g, w_hh_g, b_g, fc_w_t, fc_b2


@jax.jit
def erin_forward(x, w_ih_g, w_hh_g, b_g, fc_w_t, fc_b2):
    """x: (B, T, D) float32, batch-first like the PyTorch module."""
    B, T, D = x.shape
    R = fc_b2.shape[-1]
    # Only per-call layout op: batch-first -> time-major, so per-step kernel
    # access is whole-tile leading-axis indexing.  (Weight prep is hoisted.)
    x_tbd = jnp.transpose(x, (1, 0, 2)).astype(jnp.float32)        # (T, B, D)
    vmem = pltpu.MemorySpace.VMEM
    return pl.pallas_call(
        erin_kernel,
        out_shape=jax.ShapeDtypeStruct((B, R), jnp.float32),
        # Whole-array VMEM specs, no grid: the problem is latency/overhead
        # bound; any grid step would cost more than the entire compute.
        in_specs=[pl.BlockSpec(memory_space=vmem)] * 6,
        out_specs=pl.BlockSpec(memory_space=vmem),
    )(x_tbd, w_ih_g, w_hh_g, b_g, fc_w_t, fc_b2)


def reference_forward(x, w_ih, w_hh, b_ih, b_hh, fc_w, fc_b):
    """Pure-JAX reference mirroring PyTorch LSTM + Linear + softmax."""
    B, T, D = x.shape
    H = w_hh.shape[1]
    h = jnp.zeros((B, H), jnp.float32)
    c = jnp.zeros((B, H), jnp.float32)
    outs = []
    for t in range(T):
        gates = x[:, t, :] @ w_ih.T + h @ w_hh.T + b_ih + b_hh
        i_g = jax.nn.sigmoid(gates[:, 0 * H:1 * H])
        f_g = jax.nn.sigmoid(gates[:, 1 * H:2 * H])
        g_g = jnp.tanh(gates[:, 2 * H:3 * H])
        o_g = jax.nn.sigmoid(gates[:, 3 * H:4 * H])
        c = f_g * c + i_g * g_g
        h = o_g * jnp.tanh(c)
        outs.append(h)
    seq = jnp.stack(outs, axis=1).reshape(B, T * H)
    logits = seq @ fc_w.T + fc_b
    return jax.nn.softmax(logits, axis=1)


if __name__ == "__main__":
    # Small shapes consistent with the module's forward:
    B, T, D, H, R = 2, 8, 32, 4, 8   # batch, seq_len, in_size, hidden, num_relations

    key = jax.random.PRNGKey(0)
    ks = jax.random.split(key, 7)
    k_lstm = 1.0 / np.sqrt(H)
    k_fc = 1.0 / np.sqrt(T * H)

    x = jax.random.normal(ks[0], (B, T, D), dtype=jnp.float32)
    w_ih = jax.random.uniform(ks[1], (4 * H, D), jnp.float32, -k_lstm, k_lstm)
    w_hh = jax.random.uniform(ks[2], (4 * H, H), jnp.float32, -k_lstm, k_lstm)
    b_ih = jax.random.uniform(ks[3], (4 * H,), jnp.float32, -k_lstm, k_lstm)
    b_hh = jax.random.uniform(ks[4], (4 * H,), jnp.float32, -k_lstm, k_lstm)
    fc_w = jax.random.uniform(ks[5], (R, T * H), jnp.float32, -k_fc, k_fc)
    fc_b = jax.random.uniform(ks[6], (R,), jnp.float32, -k_fc, k_fc)

    # Weight layout prep happens once, outside the per-call jit path.
    params = prepare_params(w_ih, w_hh, b_ih, b_hh, fc_w, fc_b)

    out = erin_forward(x, *params)
    out = jax.block_until_ready(out)

    ref = reference_forward(x, w_ih, w_hh, b_ih, b_hh, fc_w, fc_b)
    np.testing.assert_allclose(np.asarray(out), np.asarray(ref),
                               rtol=2e-3, atol=2e-4)
    assert out.shape == (B, R)
    print("KERNEL_OK")
</pallas_src>

<mosaic_0001>
module attributes {stable_mosaic.version = 11 : i64} {
  func.func @erin_kernel(%arg0: memref<8x2x32xf32, #tpu.memory_space<vmem>>, %arg1: memref<4x32x4xf32, #tpu.memory_space<vmem>>, %arg2: memref<4x4x4xf32, #tpu.memory_space<vmem>>, %arg3: memref<4x1x4xf32, #tpu.memory_space<vmem>>, %arg4: memref<8x4x8xf32, #tpu.memory_space<vmem>>, %arg5: memref<1x8xf32, #tpu.memory_space<vmem>>, %arg6: memref<2x8xf32, #tpu.memory_space<vmem>>) attributes {dimension_semantics = [], scalar_prefetch = 0 : i64, scratch_operands = 0 : i64, tpu.core_type = #tpu.core_type<tc>} {
    %c0 = arith.constant 0 : index
    %c0_0 = arith.constant 0 : index
    %c0_1 = arith.constant 0 : index
    %0 = vector.load %arg1[%c0, %c0_0, %c0_1] : memref<4x32x4xf32, #tpu.memory_space<vmem>>, vector<1x32x4xf32>
    %1 = vector.shape_cast %0 : vector<1x32x4xf32> to vector<32x4xf32>
    %c1 = arith.constant 1 : index
    %c0_2 = arith.constant 0 : index
    %c0_3 = arith.constant 0 : index
    %2 = vector.load %arg1[%c1, %c0_2, %c0_3] : memref<4x32x4xf32, #tpu.memory_space<vmem>>, vector<1x32x4xf32>
    %3 = vector.shape_cast %2 : vector<1x32x4xf32> to vector<32x4xf32>
    %c2 = arith.constant 2 : index
    %c0_4 = arith.constant 0 : index
    %c0_5 = arith.constant 0 : index
    %4 = vector.load %arg1[%c2, %c0_4, %c0_5] : memref<4x32x4xf32, #tpu.memory_space<vmem>>, vector<1x32x4xf32>
    %5 = vector.shape_cast %4 : vector<1x32x4xf32> to vector<32x4xf32>
    %c3 = arith.constant 3 : index
    %c0_6 = arith.constant 0 : index
    %c0_7 = arith.constant 0 : index
    %6 = vector.load %arg1[%c3, %c0_6, %c0_7] : memref<4x32x4xf32, #tpu.memory_space<vmem>>, vector<1x32x4xf32>
    %7 = vector.shape_cast %6 : vector<1x32x4xf32> to vector<32x4xf32>
    %c0_8 = arith.constant 0 : index
    %c0_9 = arith.constant 0 : index
    %c0_10 = arith.constant 0 : index
    %8 = vector.load %arg2[%c0_8, %c0_9, %c0_10] : memref<4x4x4xf32, #tpu.memory_space<vmem>>, vector<1x4x4xf32>
    %9 = vector.shape_cast %8 : vector<1x4x4xf32> to vector<4x4xf32>
    %c1_11 = arith.constant 1 : index
    %c0_12 = arith.constant 0 : index
    %c0_13 = arith.constant 0 : index
    %10 = vector.load %arg2[%c1_11, %c0_12, %c0_13] : memref<4x4x4xf32, #tpu.memory_space<vmem>>, vector<1x4x4xf32>
    %11 = vector.shape_cast %10 : vector<1x4x4xf32> to vector<4x4xf32>
    %c2_14 = arith.constant 2 : index
    %c0_15 = arith.constant 0 : index
    %c0_16 = arith.constant 0 : index
    %12 = vector.load %arg2[%c2_14, %c0_15, %c0_16] : memref<4x4x4xf32, #tpu.memory_space<vmem>>, vector<1x4x4xf32>
    %13 = vector.shape_cast %12 : vector<1x4x4xf32> to vector<4x4xf32>
    %c3_17 = arith.constant 3 : index
    %c0_18 = arith.constant 0 : index
    %c0_19 = arith.constant 0 : index
    %14 = vector.load %arg2[%c3_17, %c0_18, %c0_19] : memref<4x4x4xf32, #tpu.memory_space<vmem>>, vector<1x4x4xf32>
    %15 = vector.shape_cast %14 : vector<1x4x4xf32> to vector<4x4xf32>
    %c0_20 = arith.constant 0 : index
    %c0_21 = arith.constant 0 : index
    %c0_22 = arith.constant 0 : index
    %16 = vector.load %arg3[%c0_20, %c0_21, %c0_22] : memref<4x1x4xf32, #tpu.memory_space<vmem>>, vector<1x1x4xf32>
    %17 = vector.shape_cast %16 : vector<1x1x4xf32> to vector<1x4xf32>
    %c1_23 = arith.constant 1 : index
    %c0_24 = arith.constant 0 : index
    %c0_25 = arith.constant 0 : index
    %18 = vector.load %arg3[%c1_23, %c0_24, %c0_25] : memref<4x1x4xf32, #tpu.memory_space<vmem>>, vector<1x1x4xf32>
    %19 = vector.shape_cast %18 : vector<1x1x4xf32> to vector<1x4xf32>
    %c2_26 = arith.constant 2 : index
    %c0_27 = arith.constant 0 : index
    %c0_28 = arith.constant 0 : index
    %20 = vector.load %arg3[%c2_26, %c0_27, %c0_28] : memref<4x1x4xf32, #tpu.memory_space<vmem>>, vector<1x1x4xf32>
    %21 = vector.shape_cast %20 : vector<1x1x4xf32> to vector<1x4xf32>
    %c3_29 = arith.constant 3 : index
    %c0_30 = arith.constant 0 : index
    %c0_31 = arith.constant 0 : index
    %22 = vector.load %arg3[%c3_29, %c0_30, %c0_31] : memref<4x1x4xf32, #tpu.memory_space<vmem>>, vector<1x1x4xf32>
    %23 = vector.shape_cast %22 : vector<1x1x4xf32> to vector<1x4xf32>
    %c0_32 = arith.constant 0 : index
    %c0_33 = arith.constant 0 : index
    %c0_34 = arith.constant 0 : index
    %24 = vector.load %arg0[%c0_32, %c0_33, %c0_34] : memref<8x2x32xf32, #tpu.memory_space<vmem>>, vector<1x2x32xf32>
    %25 = vector.shape_cast %24 : vector<1x2x32xf32> to vector<2x32xf32>
    %cst = arith.constant dense<0.000000e+00> : vector<2x4xf32>
    %26 = tpu.matmul %25, %1, %cst {dimension_numbers = #tpu.dot_dimension_numbers<[1], [0], [0], [1], [0, 0, 1, 1], [], []>} : vector<2x32xf32>, vector<32x4xf32>, vector<2x4xf32> -> vector<2x4xf32>
    %27 = vector.broadcast %17 : vector<1x4xf32> to vector<2x4xf32>
    %28 = arith.addf %26, %27 : vector<2x4xf32>
    %c1_35 = arith.constant 1 : index
    %c0_36 = arith.constant 0 : index
    %c0_37 = arith.constant 0 : index
    %29 = vector.load %arg0[%c1_35, %c0_36, %c0_37] : memref<8x2x32xf32, #tpu.memory_space<vmem>>, vector<1x2x32xf32>
    %30 = vector.shape_cast %29 : vector<1x2x32xf32> to vector<2x32xf32>
    %cst_38 = arith.constant dense<0.000000e+00> : vector<2x4xf32>
    %31 = tpu.matmul %30, %1, %cst_38 {dimension_numbers = #tpu.dot_dimension_numbers<[1], [0], [0], [1], [0, 0, 1, 1], [], []>} : vector<2x32xf32>, vector<32x4xf32>, vector<2x4xf32> -> vector<2x4xf32>
    %32 = vector.broadcast %17 : vector<1x4xf32> to vector<2x4xf32>
    %33 = arith.addf %31, %32 : vector<2x4xf32>
    %c2_39 = arith.constant 2 : index
    %c0_40 = arith.constant 0 : index
    %c0_41 = arith.constant 0 : index
    %34 = vector.load %arg0[%c2_39, %c0_40, %c0_41] : memref<8x2x32xf32, #tpu.memory_space<vmem>>, vector<1x2x32xf32>
    %35 = vector.shape_cast %34 : vector<1x2x32xf32> to vector<2x32xf32>
    %cst_42 = arith.constant dense<0.000000e+00> : vector<2x4xf32>
    %36 = tpu.matmul %35, %1, %cst_42 {dimension_numbers = #tpu.dot_dimension_numbers<[1], [0], [0], [1], [0, 0, 1, 1], [], []>} : vector<2x32xf32>, vector<32x4xf32>, vector<2x4xf32> -> vector<2x4xf32>
    %37 = vector.broadcast %17 : vector<1x4xf32> to vector<2x4xf32>
    %38 = arith.addf %36, %37 : vector<2x4xf32>
    %c3_43 = arith.constant 3 : index
    %c0_44 = arith.constant 0 : index
    %c0_45 = arith.constant 0 : index
    %39 = vector.load %arg0[%c3_43, %c0_44, %c0_45] : memref<8x2x32xf32, #tpu.memory_space<vmem>>, vector<1x2x32xf32>
    %40 = vector.shape_cast %39 : vector<1x2x32xf32> to vector<2x32xf32>
    %cst_46 = arith.constant dense<0.000000e+00> : vector<2x4xf32>
    %41 = tpu.matmul %40, %1, %cst_46 {dimension_numbers = #tpu.dot_dimension_numbers<[1], [0], [0], [1], [0, 0, 1, 1], [], []>} : vector<2x32xf32>, vector<32x4xf32>, vector<2x4xf32> -> vector<2x4xf32>
    %42 = vector.broadcast %17 : vector<1x4xf32> to vector<2x4xf32>
    %43 = arith.addf %41, %42 : vector<2x4xf32>
    %c4 = arith.constant 4 : index
    %c0_47 = arith.constant 0 : index
    %c0_48 = arith.constant 0 : index
    %44 = vector.load %arg0[%c4, %c0_47, %c0_48] : memref<8x2x32xf32, #tpu.memory_space<vmem>>, vector<1x2x32xf32>
    %45 = vector.shape_cast %44 : vector<1x2x32xf32> to vector<2x32xf32>
    %cst_49 = arith.constant dense<0.000000e+00> : vector<2x4xf32>
    %46 = tpu.matmul %45, %1, %cst_49 {dimension_numbers = #tpu.dot_dimension_numbers<[1], [0], [0], [1], [0, 0, 1, 1], [], []>} : vector<2x32xf32>, vector<32x4xf32>, vector<2x4xf32> -> vector<2x4xf32>
    %47 = vector.broadcast %17 : vector<1x4xf32> to vector<2x4xf32>
    %48 = arith.addf %46, %47 : vector<2x4xf32>
    %c5 = arith.constant 5 : index
    %c0_50 = arith.constant 0 : index
    %c0_51 = arith.constant 0 : index
    %49 = vector.load %arg0[%c5, %c0_50, %c0_51] : memref<8x2x32xf32, #tpu.memory_space<vmem>>, vector<1x2x32xf32>
    %50 = vector.shape_cast %49 : vector<1x2x32xf32> to vector<2x32xf32>
    %cst_52 = arith.constant dense<0.000000e+00> : vector<2x4xf32>
    %51 = tpu.matmul %50, %1, %cst_52 {dimension_numbers = #tpu.dot_dimension_numbers<[1], [0], [0], [1], [0, 0, 1, 1], [], []>} : vector<2x32xf32>, vector<32x4xf32>, vector<2x4xf32> -> vector<2x4xf32>
    %52 = vector.broadcast %17 : vector<1x4xf32> to vector<2x4xf32>
    %53 = arith.addf %51, %52 : vector<2x4xf32>
    %c6 = arith.constant 6 : index
    %c0_53 = arith.constant 0 : index
    %c0_54 = arith.constant 0 : index
    %54 = vector.load %arg0[%c6, %c0_53, %c0_54] : memref<8x2x32xf32, #tpu.memory_space<vmem>>, vector<1x2x32xf32>
    %55 = vector.shape_cast %54 : vector<1x2x32xf32> to vector<2x32xf32>
    %cst_55 = arith.constant dense<0.000000e+00> : vector<2x4xf32>
    %56 = tpu.matmul %55, %1, %cst_55 {dimension_numbers = #tpu.dot_dimension_numbers<[1], [0], [0], [1], [0, 0, 1, 1], [], []>} : vector<2x32xf32>, vector<32x4xf32>, vector<2x4xf32> -> vector<2x4xf32>
    %57 = vector.broadcast %17 : vector<1x4xf32> to vector<2x4xf32>
    %58 = arith.addf %56, %57 : vector<2x4xf32>
    %c7 = arith.constant 7 : index
    %c0_56 = arith.constant 0 : index
    %c0_57 = arith.constant 0 : index
    %59 = vector.load %arg0[%c7, %c0_56, %c0_57] : memref<8x2x32xf32, #tpu.memory_space<vmem>>, vector<1x2x32xf32>
    %60 = vector.shape_cast %59 : vector<1x2x32xf32> to vector<2x32xf32>
    %cst_58 = arith.constant dense<0.000000e+00> : vector<2x4xf32>
    %61 = tpu.matmul %60, %1, %cst_58 {dimension_numbers = #tpu.dot_dimension_numbers<[1], [0], [0], [1], [0, 0, 1, 1], [], []>} : vector<2x32xf32>, vector<32x4xf32>, vector<2x4xf32> -> vector<2x4xf32>
    %62 = vector.broadcast %17 : vector<1x4xf32> to vector<2x4xf32>
    %63 = arith.addf %61, %62 : vector<2x4xf32>
    %c0_59 = arith.constant 0 : index
    %c0_60 = arith.constant 0 : index
    %c0_61 = arith.constant 0 : index
    %64 = vector.load %arg0[%c0_59, %c0_60, %c0_61] : memref<8x2x32xf32, #tpu.memory_space<vmem>>, vector<1x2x32xf32>
    %65 = vector.shape_cast %64 : vector<1x2x32xf32> to vector<2x32xf32>
    %cst_62 = arith.constant dense<0.000000e+00> : vector<2x4xf32>
    %66 = tpu.matmul %65, %3, %cst_62 {dimension_numbers = #tpu.dot_dimension_numbers<[1], [0], [0], [1], [0, 0, 1, 1], [], []>} : vector<2x32xf32>, vector<32x4xf32>, vector<2x4xf32> -> vector<2x4xf32>
    %67 = vector.broadcast %19 : vector<1x4xf32> to vector<2x4xf32>
    %68 = arith.addf %66, %67 : vector<2x4xf32>
    %c1_63 = arith.constant 1 : index
    %c0_64 = arith.constant 0 : index
    %c0_65 = arith.constant 0 : index
    %69 = vector.load %arg0[%c1_63, %c0_64, %c0_65] : memref<8x2x32xf32, #tpu.memory_space<vmem>>, vector<1x2x32xf32>
    %70 = vector.shape_cast %69 : vector<1x2x32xf32> to vector<2x32xf32>
    %cst_66 = arith.constant dense<0.000000e+00> : vector<2x4xf32>
    %71 = tpu.matmul %70, %3, %cst_66 {dimension_numbers = #tpu.dot_dimension_numbers<[1], [0], [0], [1], [0, 0, 1, 1], [], []>} : vector<2x32xf32>, vector<32x4xf32>, vector<2x4xf32> -> vector<2x4xf32>
    %72 = vector.broadcast %19 : vector<1x4xf32> to vector<2x4xf32>
    %73 = arith.addf %71, %72 : vector<2x4xf32>
    %c2_67 = arith.constant 2 : index
    %c0_68 = arith.constant 0 : index
    %c0_69 = arith.constant 0 : index
    %74 = vector.load %arg0[%c2_67, %c0_68, %c0_69] : memref<8x2x32xf32, #tpu.memory_space<vmem>>, vector<1x2x32xf32>
    %75 = vector.shape_cast %74 : vector<1x2x32xf32> to vector<2x32xf32>
    %cst_70 = arith.constant dense<0.000000e+00> : vector<2x4xf32>
    %76 = tpu.matmul %75, %3, %cst_70 {dimension_numbers = #tpu.dot_dimension_numbers<[1], [0], [0], [1], [0, 0, 1, 1], [], []>} : vector<2x32xf32>, vector<32x4xf32>, vector<2x4xf32> -> vector<2x4xf32>
    %77 = vector.broadcast %19 : vector<1x4xf32> to vector<2x4xf32>
    %78 = arith.addf %76, %77 : vector<2x4xf32>
    %c3_71 = arith.constant 3 : index
    %c0_72 = arith.constant 0 : index
    %c0_73 = arith.constant 0 : index
    %79 = vector.load %arg0[%c3_71, %c0_72, %c0_73] : memref<8x2x32xf32, #tpu.memory_space<vmem>>, vector<1x2x32xf32>
    %80 = vector.shape_cast %79 : vector<1x2x32xf32> to vector<2x32xf32>
    %cst_74 = arith.constant dense<0.000000e+00> : vector<2x4xf32>
    %81 = tpu.matmul %80, %3, %cst_74 {dimension_numbers = #tpu.dot_dimension_numbers<[1], [0], [0], [1], [0, 0, 1, 1], [], []>} : vector<2x32xf32>, vector<32x4xf32>, vector<2x4xf32> -> vector<2x4xf32>
    %82 = vector.broadcast %19 : vector<1x4xf32> to vector<2x4xf32>
    %83 = arith.addf %81, %82 : vector<2x4xf32>
    %c4_75 = arith.constant 4 : index
    %c0_76 = arith.constant 0 : index
    %c0_77 = arith.constant 0 : index
    %84 = vector.load %arg0[%c4_75, %c0_76, %c0_77] : memref<8x2x32xf32, #tpu.memory_space<vmem>>, vector<1x2x32xf32>
    %85 = vector.shape_cast %84 : vector<1x2x32xf32> to vector<2x32xf32>
    %cst_78 = arith.constant dense<0.000000e+00> : vector<2x4xf32>
    %86 = tpu.matmul %85, %3, %cst_78 {dimension_numbers = #tpu.dot_dimension_numbers<[1], [0], [0], [1], [0, 0, 1, 1], [], []>} : vector<2x32xf32>, vector<32x4xf32>, vector<2x4xf32> -> vector<2x4xf32>
    %87 = vector.broadcast %19 : vector<1x4xf32> to vector<2x4xf32>
    %88 = arith.addf %86, %87 : vector<2x4xf32>
    %c5_79 = arith.constant 5 : index
    %c0_80 = arith.constant 0 : index
    %c0_81 = arith.constant 0 : index
    %89 = vector.load %arg0[%c5_79, %c0_80, %c0_81] : memref<8x2x32xf32, #tpu.memory_space<vmem>>, vector<1x2x32xf32>
    %90 = vector.shape_cast %89 : vector<1x2x32xf32> to vector<2x32xf32>
    %cst_82 = arith.constant dense<0.000000e+00> : vector<2x4xf32>
    %91 = tpu.matmul %90, %3, %cst_82 {dimension_numbers = #tpu.dot_dimension_numbers<[1], [0], [0], [1], [0, 0, 1, 1], [], []>} : vector<2x32xf32>, vector<32x4xf32>, vector<2x4xf32> -> vector<2x4xf32>
    %92 = vector.broadcast %19 : vector<1x4xf32> to vector<2x4xf32>
    %93 = arith.addf %91, %92 : vector<2x4xf32>
    %c6_83 = arith.constant 6 : index
    %c0_84 = arith.constant 0 : index
    %c0_85 = arith.constant 0 : index
    %94 = vector.load %arg0[%c6_83, %c0_84, %c0_85] : memref<8x2x32xf32, #tpu.memory_space<vmem>>, vector<1x2x32xf32>
    %95 = vector.shape_cast %94 : vector<1x2x32xf32> to vector<2x32xf32>
    %cst_86 = arith.constant dense<0.000000e+00> : vector<2x4xf32>
    %96 = tpu.matmul %95, %3, %cst_86 {dimension_numbers = #tpu.dot_dimension_numbers<[1], [0], [0], [1], [0, 0, 1, 1], [], []>} : vector<2x32xf32>, vector<32x4xf32>, vector<2x4xf32> -> vector<2x4xf32>
    %97 = vector.broadcast %19 : vector<1x4xf32> to vector<2x4xf32>
    %98 = arith.addf %96, %97 : vector<2x4xf32>
    %c7_87 = arith.constant 7 : index
    %c0_88 = arith.constant 0 : index
    %c0_89 = arith.constant 0 : index
    %99 = vector.load %arg0[%c7_87, %c0_88, %c0_89] : memref<8x2x32xf32, #tpu.memory_space<vmem>>, vector<1x2x32xf32>
    %100 = vector.shape_cast %99 : vector<1x2x32xf32> to vector<2x32xf32>
    %cst_90 = arith.constant dense<0.000000e+00> : vector<2x4xf32>
    %101 = tpu.matmul %100, %3, %cst_90 {dimension_numbers = #tpu.dot_dimension_numbers<[1], [0], [0], [1], [0, 0, 1, 1], [], []>} : vector<2x32xf32>, vector<32x4xf32>, vector<2x4xf32> -> vector<2x4xf32>
    %102 = vector.broadcast %19 : vector<1x4xf32> to vector<2x4xf32>
    %103 = arith.addf %101, %102 : vector<2x4xf32>
    %c0_91 = arith.constant 0 : index
    %c0_92 = arith.constant 0 : index
    %c0_93 = arith.constant 0 : index
    %104 = vector.load %arg0[%c0_91, %c0_92, %c0_93] : memref<8x2x32xf32, #tpu.memory_space<vmem>>, vector<1x2x32xf32>
    %105 = vector.shape_cast %104 : vector<1x2x32xf32> to vector<2x32xf32>
    %cst_94 = arith.constant dense<0.000000e+00> : vector<2x4xf32>
    %106 = tpu.matmul %105, %5, %cst_94 {dimension_numbers = #tpu.dot_dimension_numbers<[1], [0], [0], [1], [0, 0, 1, 1], [], []>} : vector<2x32xf32>, vector<32x4xf32>, vector<2x4xf32> -> vector<2x4xf32>
    %107 = vector.broadcast %21 : vector<1x4xf32> to vector<2x4xf32>
    %108 = arith.addf %106, %107 : vector<2x4xf32>
    %c1_95 = arith.constant 1 : index
    %c0_96 = arith.constant 0 : index
    %c0_97 = arith.constant 0 : index
    %109 = vector.load %arg0[%c1_95, %c0_96, %c0_97] : memref<8x2x32xf32, #tpu.memory_space<vmem>>, vector<1x2x32xf32>
    %110 = vector.shape_cast %109 : vector<1x2x32xf32> to vector<2x32xf32>
    %cst_98 = arith.constant dense<0.000000e+00> : vector<2x4xf32>
    %111 = tpu.matmul %110, %5, %cst_98 {dimension_numbers = #tpu.dot_dimension_numbers<[1], [0], [0], [1], [0, 0, 1, 1], [], []>} : vector<2x32xf32>, vector<32x4xf32>, vector<2x4xf32> -> vector<2x4xf32>
    %112 = vector.broadcast %21 : vector<1x4xf32> to vector<2x4xf32>
    %113 = arith.addf %111, %112 : vector<2x4xf32>
    %c2_99 = arith.constant 2 : index
    %c0_100 = arith.constant 0 : index
    %c0_101 = arith.constant 0 : index
    %114 = vector.load %arg0[%c2_99, %c0_100, %c0_101] : memref<8x2x32xf32, #tpu.memory_space<vmem>>, vector<1x2x32xf32>
    %115 = vector.shape_cast %114 : vector<1x2x32xf32> to vector<2x32xf32>
    %cst_102 = arith.constant dense<0.000000e+00> : vector<2x4xf32>
    %116 = tpu.matmul %115, %5, %cst_102 {dimension_numbers = #tpu.dot_dimension_numbers<[1], [0], [0], [1], [0, 0, 1, 1], [], []>} : vector<2x32xf32>, vector<32x4xf32>, vector<2x4xf32> -> vector<2x4xf32>
    %117 = vector.broadcast %21 : vector<1x4xf32> to vector<2x4xf32>
    %118 = arith.addf %116, %117 : vector<2x4xf32>
    %c3_103 = arith.constant 3 : index
    %c0_104 = arith.constant 0 : index
    %c0_105 = arith.constant 0 : index
    %119 = vector.load %arg0[%c3_103, %c0_104, %c0_105] : memref<8x2x32xf32, #tpu.memory_space<vmem>>, vector<1x2x32xf32>
    %120 = vector.shape_cast %119 : vector<1x2x32xf32> to vector<2x32xf32>
    %cst_106 = arith.constant dense<0.000000e+00> : vector<2x4xf32>
    %121 = tpu.matmul %120, %5, %cst_106 {dimension_numbers = #tpu.dot_dimension_numbers<[1], [0], [0], [1], [0, 0, 1, 1], [], []>} : vector<2x32xf32>, vector<32x4xf32>, vector<2x4xf32> -> vector<2x4xf32>
    %122 = vector.broadcast %21 : vector<1x4xf32> to vector<2x4xf32>
    %123 = arith.addf %121, %122 : vector<2x4xf32>
    %c4_107 = arith.constant 4 : index
    %c0_108 = arith.constant 0 : index
    %c0_109 = arith.constant 0 : index
    %124 = vector.load %arg0[%c4_107, %c0_108, %c0_109] : memref<8x2x32xf32, #tpu.memory_space<vmem>>, vector<1x2x32xf32>
    %125 = vector.shape_cast %124 : vector<1x2x32xf32> to vector<2x32xf32>
    %cst_110 = arith.constant dense<0.000000e+00> : vector<2x4xf32>
    %126 = tpu.matmul %125, %5, %cst_110 {dimension_numbers = #tpu.dot_dimension_numbers<[1], [0], [0], [1], [0, 0, 1, 1], [], []>} : vector<2x32xf32>, vector<32x4xf32>, vector<2x4xf32> -> vector<2x4xf32>
    %127 = vector.broadcast %21 : vector<1x4xf32> to vector<2x4xf32>
    %128 = arith.addf %126, %127 : vector<2x4xf32>
    %c5_111 = arith.constant 5 : index
    %c0_112 = arith.constant 0 : index
    %c0_113 = arith.constant 0 : index
    %129 = vector.load %arg0[%c5_111, %c0_112, %c0_113] : memref<8x2x32xf32, #tpu.memory_space<vmem>>, vector<1x2x32xf32>
    %130 = vector.shape_cast %129 : vector<1x2x32xf32> to vector<2x32xf32>
    %cst_114 = arith.constant dense<0.000000e+00> : vector<2x4xf32>
    %131 = tpu.matmul %130, %5, %cst_114 {dimension_numbers = #tpu.dot_dimension_numbers<[1], [0], [0], [1], [0, 0, 1, 1], [], []>} : vector<2x32xf32>, vector<32x4xf32>, vector<2x4xf32> -> vector<2x4xf32>
    %132 = vector.broadcast %21 : vector<1x4xf32> to vector<2x4xf32>
    %133 = arith.addf %131, %132 : vector<2x4xf32>
    %c6_115 = arith.constant 6 : index
    %c0_116 = arith.constant 0 : index
    %c0_117 = arith.constant 0 : index
    %134 = vector.load %arg0[%c6_115, %c0_116, %c0_117] : memref<8x2x32xf32, #tpu.memory_space<vmem>>, vector<1x2x32xf32>
    %135 = vector.shape_cast %134 : vector<1x2x32xf32> to vector<2x32xf32>
    %cst_118 = arith.constant dense<0.000000e+00> : vector<2x4xf32>
    %136 = tpu.matmul %135, %5, %cst_118 {dimension_numbers = #tpu.dot_dimension_numbers<[1], [0], [0], [1], [0, 0, 1, 1], [], []>} : vector<2x32xf32>, vector<32x4xf32>, vector<2x4xf32> -> vector<2x4xf32>
    %137 = vector.broadcast %21 : vector<1x4xf32> to vector<2x4xf32>
    %138 = arith.addf %136, %137 : vector<2x4xf32>
    %c7_119 = arith.constant 7 : index
    %c0_120 = arith.constant 0 : index
    %c0_121 = arith.constant 0 : index
    %139 = vector.load %arg0[%c7_119, %c0_120, %c0_121] : memref<8x2x32xf32, #tpu.memory_space<vmem>>, vector<1x2x32xf32>
    %140 = vector.shape_cast %139 : vector<1x2x32xf32> to vector<2x32xf32>
    %cst_122 = arith.constant dense<0.000000e+00> : vector<2x4xf32>
    %141 = tpu.matmul %140, %5, %cst_122 {dimension_numbers = #tpu.dot_dimension_numbers<[1], [0], [0], [1], [0, 0, 1, 1], [], []>} : vector<2x32xf32>, vector<32x4xf32>, vector<2x4xf32> -> vector<2x4xf32>
    %142 = vector.broadcast %21 : vector<1x4xf32> to vector<2x4xf32>
    %143 = arith.addf %141, %142 : vector<2x4xf32>
    %c0_123 = arith.constant 0 : index
    %c0_124 = arith.constant 0 : index
    %c0_125 = arith.constant 0 : index
    %144 = vector.load %arg0[%c0_123, %c0_124, %c0_125] : memref<8x2x32xf32, #tpu.memory_space<vmem>>, vector<1x2x32xf32>
    %145 = vector.shape_cast %144 : vector<1x2x32xf32> to vector<2x32xf32>
    %cst_126 = arith.constant dense<0.000000e+00> : vector<2x4xf32>
    %146 = tpu.matmul %145, %7, %cst_126 {dimension_numbers = #tpu.dot_dimension_numbers<[1], [0], [0], [1], [0, 0, 1, 1], [], []>} : vector<2x32xf32>, vector<32x4xf32>, vector<2x4xf32> -> vector<2x4xf32>
    %147 = vector.broadcast %23 : vector<1x4xf32> to vector<2x4xf32>
    %148 = arith.addf %146, %147 : vector<2x4xf32>
    %c1_127 = arith.constant 1 : index
    %c0_128 = arith.constant 0 : index
    %c0_129 = arith.constant 0 : index
    %149 = vector.load %arg0[%c1_127, %c0_128, %c0_129] : memref<8x2x32xf32, #tpu.memory_space<vmem>>, vector<1x2x32xf32>
    %150 = vector.shape_cast %149 : vector<1x2x32xf32> to vector<2x32xf32>
    %cst_130 = arith.constant dense<0.000000e+00> : vector<2x4xf32>
    %151 = tpu.matmul %150, %7, %cst_130 {dimension_numbers = #tpu.dot_dimension_numbers<[1], [0], [0], [1], [0, 0, 1, 1], [], []>} : vector<2x32xf32>, vector<32x4xf32>, vector<2x4xf32> -> vector<2x4xf32>
    %152 = vector.broadcast %23 : vector<1x4xf32> to vector<2x4xf32>
    %153 = arith.addf %151, %152 : vector<2x4xf32>
    %c2_131 = arith.constant 2 : index
    %c0_132 = arith.constant 0 : index
    %c0_133 = arith.constant 0 : index
    %154 = vector.load %arg0[%c2_131, %c0_132, %c0_133] : memref<8x2x32xf32, #tpu.memory_space<vmem>>, vector<1x2x32xf32>
    %155 = vector.shape_cast %154 : vector<1x2x32xf32> to vector<2x32xf32>
    %cst_134 = arith.constant dense<0.000000e+00> : vector<2x4xf32>
    %156 = tpu.matmul %155, %7, %cst_134 {dimension_numbers = #tpu.dot_dimension_numbers<[1], [0], [0], [1], [0, 0, 1, 1], [], []>} : vector<2x32xf32>, vector<32x4xf32>, vector<2x4xf32> -> vector<2x4xf32>
    %157 = vector.broadcast %23 : vector<1x4xf32> to vector<2x4xf32>
    %158 = arith.addf %156, %157 : vector<2x4xf32>
    %c3_135 = arith.constant 3 : index
    %c0_136 = arith.constant 0 : index
    %c0_137 = arith.constant 0 : index
    %159 = vector.load %arg0[%c3_135, %c0_136, %c0_137] : memref<8x2x32xf32, #tpu.memory_space<vmem>>, vector<1x2x32xf32>
    %160 = vector.shape_cast %159 : vector<1x2x32xf32> to vector<2x32xf32>
    %cst_138 = arith.constant dense<0.000000e+00> : vector<2x4xf32>
    %161 = tpu.matmul %160, %7, %cst_138 {dimension_numbers = #tpu.dot_dimension_numbers<[1], [0], [0], [1], [0, 0, 1, 1], [], []>} : vector<2x32xf32>, vector<32x4xf32>, vector<2x4xf32> -> vector<2x4xf32>
    %162 = vector.broadcast %23 : vector<1x4xf32> to vector<2x4xf32>
    %163 = arith.addf %161, %162 : vector<2x4xf32>
    %c4_139 = arith.constant 4 : index
    %c0_140 = arith.constant 0 : index
    %c0_141 = arith.constant 0 : index
    %164 = vector.load %arg0[%c4_139, %c0_140, %c0_141] : memref<8x2x32xf32, #tpu.memory_space<vmem>>, vector<1x2x32xf32>
    %165 = vector.shape_cast %164 : vector<1x2x32xf32> to vector<2x32xf32>
    %cst_142 = arith.constant dense<0.000000e+00> : vector<2x4xf32>
    %166 = tpu.matmul %165, %7, %cst_142 {dimension_numbers = #tpu.dot_dimension_numbers<[1], [0], [0], [1], [0, 0, 1, 1], [], []>} : vector<2x32xf32>, vector<32x4xf32>, vector<2x4xf32> -> vector<2x4xf32>
    %167 = vector.broadcast %23 : vector<1x4xf32> to vector<2x4xf32>
    %168 = arith.addf %166, %167 : vector<2x4xf32>
    %c5_143 = arith.constant 5 : index
    %c0_144 = arith.constant 0 : index
    %c0_145 = arith.constant 0 : index
    %169 = vector.load %arg0[%c5_143, %c0_144, %c0_145] : memref<8x2x32xf32, #tpu.memory_space<vmem>>, vector<1x2x32xf32>
    %170 = vector.shape_cast %169 : vector<1x2x32xf32> to vector<2x32xf32>
    %cst_146 = arith.constant dense<0.000000e+00> : vector<2x4xf32>
    %171 = tpu.matmul %170, %7, %cst_146 {dimension_numbers = #tpu.dot_dimension_numbers<[1], [0], [0], [1], [0, 0, 1, 1], [], []>} : vector<2x32xf32>, vector<32x4xf32>, vector<2x4xf32> -> vector<2x4xf32>
    %172 = vector.broadcast %23 : vector<1x4xf32> to vector<2x4xf32>
    %173 = arith.addf %171, %172 : vector<2x4xf32>
    %c6_147 = arith.constant 6 : index
    %c0_148 = arith.constant 0 : index
    %c0_149 = arith.constant 0 : index
    %174 = vector.load %arg0[%c6_147, %c0_148, %c0_149] : memref<8x2x32xf32, #tpu.memory_space<vmem>>, vector<1x2x32xf32>
    %175 = vector.shape_cast %174 : vector<1x2x32xf32> to vector<2x32xf32>
    %cst_150 = arith.constant dense<0.000000e+00> : vector<2x4xf32>
    %176 = tpu.matmul %175, %7, %cst_150 {dimension_numbers = #tpu.dot_dimension_numbers<[1], [0], [0], [1], [0, 0, 1, 1], [], []>} : vector<2x32xf32>, vector<32x4xf32>, vector<2x4xf32> -> vector<2x4xf32>
    %177 = vector.broadcast %23 : vector<1x4xf32> to vector<2x4xf32>
    %178 = arith.addf %176, %177 : vector<2x4xf32>
    %c7_151 = arith.constant 7 : index
    %c0_152 = arith.constant 0 : index
    %c0_153 = arith.constant 0 : index
    %179 = vector.load %arg0[%c7_151, %c0_152, %c0_153] : memref<8x2x32xf32, #tpu.memory_space<vmem>>, vector<1x2x32xf32>
    %180 = vector.shape_cast %179 : vector<1x2x32xf32> to vector<2x32xf32>
    %cst_154 = arith.constant dense<0.000000e+00> : vector<2x4xf32>
    %181 = tpu.matmul %180, %7, %cst_154 {dimension_numbers = #tpu.dot_dimension_numbers<[1], [0], [0], [1], [0, 0, 1, 1], [], []>} : vector<2x32xf32>, vector<32x4xf32>, vector<2x4xf32> -> vector<2x4xf32>
    %182 = vector.broadcast %23 : vector<1x4xf32> to vector<2x4xf32>
    %183 = arith.addf %181, %182 : vector<2x4xf32>
    %cst_155 = arith.constant 0.000000e+00 : f32
    %184 = vector.broadcast %cst_155 : f32 to vector<2x4xf32>
    %cst_156 = arith.constant 0.000000e+00 : f32
    %185 = vector.broadcast %cst_156 : f32 to vector<2x4xf32>
    %cst_157 = arith.constant 0.000000e+00 : f32
    %186 = vector.broadcast %cst_157 : f32 to vector<2x8xf32>
    %cst_158 = arith.constant dense<0.000000e+00> : vector<2x4xf32>
    %187 = tpu.matmul %184, %9, %cst_158 {dimension_numbers = #tpu.dot_dimension_numbers<[1], [0], [0], [1], [0, 0, 1, 1], [], []>} : vector<2x4xf32>, vector<4x4xf32>, vector<2x4xf32> -> vector<2x4xf32>
    %188 = arith.addf %28, %187 : vector<2x4xf32>
    %189 = arith.negf %188 : vector<2x4xf32>
    %190 = math.exp %189 : vector<2x4xf32>
    %cst_159 = arith.constant 1.000000e+00 : f32
    %191 = vector.broadcast %cst_159 : f32 to vector<2x4xf32>
    %192 = arith.addf %191, %190 : vector<2x4xf32>
    %193 = arith.divf %191, %192 : vector<2x4xf32>
    %cst_160 = arith.constant dense<0.000000e+00> : vector<2x4xf32>
    %194 = tpu.matmul %184, %11, %cst_160 {dimension_numbers = #tpu.dot_dimension_numbers<[1], [0], [0], [1], [0, 0, 1, 1], [], []>} : vector<2x4xf32>, vector<4x4xf32>, vector<2x4xf32> -> vector<2x4xf32>
    %195 = arith.addf %68, %194 : vector<2x4xf32>
    %196 = arith.negf %195 : vector<2x4xf32>
    %197 = math.exp %196 : vector<2x4xf32>
    %cst_161 = arith.constant 1.000000e+00 : f32
    %198 = vector.broadcast %cst_161 : f32 to vector<2x4xf32>
    %199 = arith.addf %198, %197 : vector<2x4xf32>
    %200 = arith.divf %198, %199 : vector<2x4xf32>
    %cst_162 = arith.constant dense<0.000000e+00> : vector<2x4xf32>
    %201 = tpu.matmul %184, %13, %cst_162 {dimension_numbers = #tpu.dot_dimension_numbers<[1], [0], [0], [1], [0, 0, 1, 1], [], []>} : vector<2x4xf32>, vector<4x4xf32>, vector<2x4xf32> -> vector<2x4xf32>
    %202 = arith.addf %108, %201 : vector<2x4xf32>
    %203 = math.tanh %202 : vector<2x4xf32>
    %cst_163 = arith.constant dense<0.000000e+00> : vector<2x4xf32>
    %204 = tpu.matmul %184, %15, %cst_163 {dimension_numbers = #tpu.dot_dimension_numbers<[1], [0], [0], [1], [0, 0, 1, 1], [], []>} : vector<2x4xf32>, vector<4x4xf32>, vector<2x4xf32> -> vector<2x4xf32>
    %205 = arith.addf %148, %204 : vector<2x4xf32>
    %206 = arith.negf %205 : vector<2x4xf32>
    %207 = math.exp %206 : vector<2x4xf32>
    %cst_164 = arith.constant 1.000000e+00 : f32
    %208 = vector.broadcast %cst_164 : f32 to vector<2x4xf32>
    %209 = arith.addf %208, %207 : vector<2x4xf32>
    %210 = arith.divf %208, %209 : vector<2x4xf32>
    %211 = arith.mulf %200, %185 : vector<2x4xf32>
    %212 = arith.mulf %193, %203 : vector<2x4xf32>
    %213 = arith.addf %211, %212 : vector<2x4xf32>
    %214 = math.tanh %213 : vector<2x4xf32>
    %215 = arith.mulf %210, %214 : vector<2x4xf32>
    %c0_165 = arith.constant 0 : index
    %c0_166 = arith.constant 0 : index
    %c0_167 = arith.constant 0 : index
    %216 = vector.load %arg4[%c0_165, %c0_166, %c0_167] : memref<8x4x8xf32, #tpu.memory_space<vmem>>, vector<1x4x8xf32>
    %217 = vector.shape_cast %216 : vector<1x4x8xf32> to vector<4x8xf32>
    %cst_168 = arith.constant dense<0.000000e+00> : vector<2x8xf32>
    %218 = tpu.matmul %215, %217, %cst_168 {dimension_numbers = #tpu.dot_dimension_numbers<[1], [0], [0], [1], [0, 0, 1, 1], [], []>} : vector<2x4xf32>, vector<4x8xf32>, vector<2x8xf32> -> vector<2x8xf32>
    %219 = arith.addf %186, %218 : vector<2x8xf32>
    %cst_169 = arith.constant dense<0.000000e+00> : vector<2x4xf32>
    %220 = tpu.matmul %215, %9, %cst_169 {dimension_numbers = #tpu.dot_dimension_numbers<[1], [0], [0], [1], [0, 0, 1, 1], [], []>} : vector<2x4xf32>, vector<4x4xf32>, vector<2x4xf32> -> vector<2x4xf32>
    %221 = arith.addf %33, %220 : vector<2x4xf32>
    %222 = arith.negf %221 : vector<2x4xf32>
    %223 = math.exp %222 : vector<2x4xf32>
    %cst_170 = arith.constant 1.000000e+00 : f32
    %224 = vector.broadcast %cst_170 : f32 to vector<2x4xf32>
    %225 = arith.addf %224, %223 : vector<2x4xf32>
    %226 = arith.divf %224, %225 : vector<2x4xf32>
    %cst_171 = arith.constant dense<0.000000e+00> : vector<2x4xf32>
    %227 = tpu.matmul %215, %11, %cst_171 {dimension_numbers = #tpu.dot_dimension_numbers<[1], [0], [0], [1], [0, 0, 1, 1], [], []>} : vector<2x4xf32>, vector<4x4xf32>, vector<2x4xf32> -> vector<2x4xf32>
    %228 = arith.addf %73, %227 : vector<2x4xf32>
    %229 = arith.negf %228 : vector<2x4xf32>
    %230 = math.exp %229 : vector<2x4xf32>
    %cst_172 = arith.constant 1.000000e+00 : f32
    %231 = vector.broadcast %cst_172 : f32 to vector<2x4xf32>
    %232 = arith.addf %231, %230 : vector<2x4xf32>
    %233 = arith.divf %231, %232 : vector<2x4xf32>
    %cst_173 = arith.constant dense<0.000000e+00> : vector<2x4xf32>
    %234 = tpu.matmul %215, %13, %cst_173 {dimension_numbers = #tpu.dot_dimension_numbers<[1], [0], [0], [1], [0, 0, 1, 1], [], []>} : vector<2x4xf32>, vector<4x4xf32>, vector<2x4xf32> -> vector<2x4xf32>
    %235 = arith.addf %113, %234 : vector<2x4xf32>
    %236 = math.tanh %235 : vector<2x4xf32>
    %cst_174 = arith.constant dense<0.000000e+00> : vector<2x4xf32>
    %237 = tpu.matmul %215, %15, %cst_174 {dimension_numbers = #tpu.dot_dimension_numbers<[1], [0], [0], [1], [0, 0, 1, 1], [], []>} : vector<2x4xf32>, vector<4x4xf32>, vector<2x4xf32> -> vector<2x4xf32>
    %238 = arith.addf %153, %237 : vector<2x4xf32>
    %239 = arith.negf %238 : vector<2x4xf32>
    %240 = math.exp %239 : vector<2x4xf32>
    %cst_175 = arith.constant 1.000000e+00 : f32
    %241 = vector.broadcast %cst_175 : f32 to vector<2x4xf32>
    %242 = arith.addf %241, %240 : vector<2x4xf32>
    %243 = arith.divf %241, %242 : vector<2x4xf32>
    %244 = arith.mulf %233, %213 : vector<2x4xf32>
    %245 = arith.mulf %226, %236 : vector<2x4xf32>
    %246 = arith.addf %244, %245 : vector<2x4xf32>
    %247 = math.tanh %246 : vector<2x4xf32>
    %248 = arith.mulf %243, %247 : vector<2x4xf32>
    %c1_176 = arith.constant 1 : index
    %c0_177 = arith.constant 0 : index
    %c0_178 = arith.constant 0 : index
    %249 = vector.load %arg4[%c1_176, %c0_177, %c0_178] : memref<8x4x8xf32, #tpu.memory_space<vmem>>, vector<1x4x8xf32>
    %250 = vector.shape_cast %249 : vector<1x4x8xf32> to vector<4x8xf32>
    %cst_179 = arith.constant dense<0.000000e+00> : vector<2x8xf32>
    %251 = tpu.matmul %248, %250, %cst_179 {dimension_numbers = #tpu.dot_dimension_numbers<[1], [0], [0], [1], [0, 0, 1, 1], [], []>} : vector<2x4xf32>, vector<4x8xf32>, vector<2x8xf32> -> vector<2x8xf32>
    %252 = arith.addf %219, %251 : vector<2x8xf32>
    %cst_180 = arith.constant dense<0.000000e+00> : vector<2x4xf32>
    %253 = tpu.matmul %248, %9, %cst_180 {dimension_numbers = #tpu.dot_dimension_numbers<[1], [0], [0], [1], [0, 0, 1, 1], [], []>} : vector<2x4xf32>, vector<4x4xf32>, vector<2x4xf32> -> vector<2x4xf32>
    %254 = arith.addf %38, %253 : vector<2x4xf32>
    %255 = arith.negf %254 : vector<2x4xf32>
    %256 = math.exp %255 : vector<2x4xf32>
    %cst_181 = arith.constant 1.000000e+00 : f32
    %257 = vector.broadcast %cst_181 : f32 to vector<2x4xf32>
    %258 = arith.addf %257, %256 : vector<2x4xf32>
    %259 = arith.divf %257, %258 : vector<2x4xf32>
    %cst_182 = arith.constant dense<0.000000e+00> : vector<2x4xf32>
    %260 = tpu.matmul %248, %11, %cst_182 {dimension_numbers = #tpu.dot_dimension_numbers<[1], [0], [0], [1], [0, 0, 1, 1], [], []>} : vector<2x4xf32>, vector<4x4xf32>, vector<2x4xf32> -> vector<2x4xf32>
    %261 = arith.addf %78, %260 : vector<2x4xf32>
    %262 = arith.negf %261 : vector<2x4xf32>
    %263 = math.exp %262 : vector<2x4xf32>
    %cst_183 = arith.constant 1.000000e+00 : f32
    %264 = vector.broadcast %cst_183 : f32 to vector<2x4xf32>
    %265 = arith.addf %264, %263 : vector<2x4xf32>
    %266 = arith.divf %264, %265 : vector<2x4xf32>
    %cst_184 = arith.constant dense<0.000000e+00> : vector<2x4xf32>
    %267 = tpu.matmul %248, %13, %cst_184 {dimension_numbers = #tpu.dot_dimension_numbers<[1], [0], [0], [1], [0, 0, 1, 1], [], []>} : vector<2x4xf32>, vector<4x4xf32>, vector<2x4xf32> -> vector<2x4xf32>
    %268 = arith.addf %118, %267 : vector<2x4xf32>
    %269 = math.tanh %268 : vector<2x4xf32>
    %cst_185 = arith.constant dense<0.000000e+00> : vector<2x4xf32>
    %270 = tpu.matmul %248, %15, %cst_185 {dimension_numbers = #tpu.dot_dimension_numbers<[1], [0], [0], [1], [0, 0, 1, 1], [], []>} : vector<2x4xf32>, vector<4x4xf32>, vector<2x4xf32> -> vector<2x4xf32>
    %271 = arith.addf %158, %270 : vector<2x4xf32>
    %272 = arith.negf %271 : vector<2x4xf32>
    %273 = math.exp %272 : vector<2x4xf32>
    %cst_186 = arith.constant 1.000000e+00 : f32
    %274 = vector.broadcast %cst_186 : f32 to vector<2x4xf32>
    %275 = arith.addf %274, %273 : vector<2x4xf32>
    %276 = arith.divf %274, %275 : vector<2x4xf32>
    %277 = arith.mulf %266, %246 : vector<2x4xf32>
    %278 = arith.mulf %259, %269 : vector<2x4xf32>
    %279 = arith.addf %277, %278 : vector<2x4xf32>
    %280 = math.tanh %279 : vector<2x4xf32>
    %281 = arith.mulf %276, %280 : vector<2x4xf32>
    %c2_187 = arith.constant 2 : index
    %c0_188 = arith.constant 0 : index
    %c0_189 = arith.constant 0 : index
    %282 = vector.load %arg4[%c2_187, %c0_188, %c0_189] : memref<8x4x8xf32, #tpu.memory_space<vmem>>, vector<1x4x8xf32>
    %283 = vector.shape_cast %282 : vector<1x4x8xf32> to vector<4x8xf32>
    %cst_190 = arith.constant dense<0.000000e+00> : vector<2x8xf32>
    %284 = tpu.matmul %281, %283, %cst_190 {dimension_numbers = #tpu.dot_dimension_numbers<[1], [0], [0], [1], [0, 0, 1, 1], [], []>} : vector<2x4xf32>, vector<4x8xf32>, vector<2x8xf32> -> vector<2x8xf32>
    %285 = arith.addf %252, %284 : vector<2x8xf32>
    %cst_191 = arith.constant dense<0.000000e+00> : vector<2x4xf32>
    %286 = tpu.matmul %281, %9, %cst_191 {dimension_numbers = #tpu.dot_dimension_numbers<[1], [0], [0], [1], [0, 0, 1, 1], [], []>} : vector<2x4xf32>, vector<4x4xf32>, vector<2x4xf32> -> vector<2x4xf32>
    %287 = arith.addf %43, %286 : vector<2x4xf32>
    %288 = arith.negf %287 : vector<2x4xf32>
    %289 = math.exp %288 : vector<2x4xf32>
    %cst_192 = arith.constant 1.000000e+00 : f32
    %290 = vector.broadcast %cst_192 : f32 to vector<2x4xf32>
    %291 = arith.addf %290, %289 : vector<2x4xf32>
    %292 = arith.divf %290, %291 : vector<2x4xf32>
    %cst_193 = arith.constant dense<0.000000e+00> : vector<2x4xf32>
    %293 = tpu.matmul %281, %11, %cst_193 {dimension_numbers = #tpu.dot_dimension_numbers<[1], [0], [0], [1], [0, 0, 1, 1], [], []>} : vector<2x4xf32>, vector<4x4xf32>, vector<2x4xf32> -> vector<2x4xf32>
    %294 = arith.addf %83, %293 : vector<2x4xf32>
    %295 = arith.negf %294 : vector<2x4xf32>
    %296 = math.exp %295 : vector<2x4xf32>
    %cst_194 = arith.constant 1.000000e+00 : f32
    %297 = vector.broadcast %cst_194 : f32 to vector<2x4xf32>
    %298 = arith.addf %297, %296 : vector<2x4xf32>
    %299 = arith.divf %297, %298 : vector<2x4xf32>
    %cst_195 = arith.constant dense<0.000000e+00> : vector<2x4xf32>
    %300 = tpu.matmul %281, %13, %cst_195 {dimension_numbers = #tpu.dot_dimension_numbers<[1], [0], [0], [1], [0, 0, 1, 1], [], []>} : vector<2x4xf32>, vector<4x4xf32>, vector<2x4xf32> -> vector<2x4xf32>
    %301 = arith.addf %123, %300 : vector<2x4xf32>
    %302 = math.tanh %301 : vector<2x4xf32>
    %cst_196 = arith.constant dense<0.000000e+00> : vector<2x4xf32>
    %303 = tpu.matmul %281, %15, %cst_196 {dimension_numbers = #tpu.dot_dimension_numbers<[1], [0], [0], [1], [0, 0, 1, 1], [], []>} : vector<2x4xf32>, vector<4x4xf32>, vector<2x4xf32> -> vector<2x4xf32>
    %304 = arith.addf %163, %303 : vector<2x4xf32>
    %305 = arith.negf %304 : vector<2x4xf32>
    %306 = math.exp %305 : vector<2x4xf32>
    %cst_197 = arith.constant 1.000000e+00 : f32
    %307 = vector.broadcast %cst_197 : f32 to vector<2x4xf32>
    %308 = arith.addf %307, %306 : vector<2x4xf32>
    %309 = arith.divf %307, %308 : vector<2x4xf32>
    %310 = arith.mulf %299, %279 : vector<2x4xf32>
    %311 = arith.mulf %292, %302 : vector<2x4xf32>
    %312 = arith.addf %310, %311 : vector<2x4xf32>
    %313 = math.tanh %312 : vector<2x4xf32>
    %314 = arith.mulf %309, %313 : vector<2x4xf32>
    %c3_198 = arith.constant 3 : index
    %c0_199 = arith.constant 0 : index
    %c0_200 = arith.constant 0 : index
    %315 = vector.load %arg4[%c3_198, %c0_199, %c0_200] : memref<8x4x8xf32, #tpu.memory_space<vmem>>, vector<1x4x8xf32>
    %316 = vector.shape_cast %315 : vector<1x4x8xf32> to vector<4x8xf32>
    %cst_201 = arith.constant dense<0.000000e+00> : vector<2x8xf32>
    %317 = tpu.matmul %314, %316, %cst_201 {dimension_numbers = #tpu.dot_dimension_numbers<[1], [0], [0], [1], [0, 0, 1, 1], [], []>} : vector<2x4xf32>, vector<4x8xf32>, vector<2x8xf32> -> vector<2x8xf32>
    %318 = arith.addf %285, %317 : vector<2x8xf32>
    %cst_202 = arith.constant dense<0.000000e+00> : vector<2x4xf32>
    %319 = tpu.matmul %314, %9, %cst_202 {dimension_numbers = #tpu.dot_dimension_numbers<[1], [0], [0], [1], [0, 0, 1, 1], [], []>} : vector<2x4xf32>, vector<4x4xf32>, vector<2x4xf32> -> vector<2x4xf32>
    %320 = arith.addf %48, %319 : vector<2x4xf32>
    %321 = arith.negf %320 : vector<2x4xf32>
    %322 = math.exp %321 : vector<2x4xf32>
    %cst_203 = arith.constant 1.000000e+00 : f32
    %323 = vector.broadcast %cst_203 : f32 to vector<2x4xf32>
    %324 = arith.addf %323, %322 : vector<2x4xf32>
    %325 = arith.divf %323, %324 : vector<2x4xf32>
    %cst_204 = arith.constant dense<0.000000e+00> : vector<2x4xf32>
    %326 = tpu.matmul %314, %11, %cst_204 {dimension_numbers = #tpu.dot_dimension_numbers<[1], [0], [0], [1], [0, 0, 1, 1], [], []>} : vector<2x4xf32>, vector<4x4xf32>, vector<2x4xf32> -> vector<2x4xf32>
    %327 = arith.addf %88, %326 : vector<2x4xf32>
    %328 = arith.negf %327 : vector<2x4xf32>
    %329 = math.exp %328 : vector<2x4xf32>
    %cst_205 = arith.constant 1.000000e+00 : f32
    %330 = vector.broadcast %cst_205 : f32 to vector<2x4xf32>
    %331 = arith.addf %330, %329 : vector<2x4xf32>
    %332 = arith.divf %330, %331 : vector<2x4xf32>
    %cst_206 = arith.constant dense<0.000000e+00> : vector<2x4xf32>
    %333 = tpu.matmul %314, %13, %cst_206 {dimension_numbers = #tpu.dot_dimension_numbers<[1], [0], [0], [1], [0, 0, 1, 1], [], []>} : vector<2x4xf32>, vector<4x4xf32>, vector<2x4xf32> -> vector<2x4xf32>
    %334 = arith.addf %128, %333 : vector<2x4xf32>
    %335 = math.tanh %334 : vector<2x4xf32>
    %cst_207 = arith.constant dense<0.000000e+00> : vector<2x4xf32>
    %336 = tpu.matmul %314, %15, %cst_207 {dimension_numbers = #tpu.dot_dimension_numbers<[1], [0], [0], [1], [0, 0, 1, 1], [], []>} : vector<2x4xf32>, vector<4x4xf32>, vector<2x4xf32> -> vector<2x4xf32>
    %337 = arith.addf %168, %336 : vector<2x4xf32>
    %338 = arith.negf %337 : vector<2x4xf32>
    %339 = math.exp %338 : vector<2x4xf32>
    %cst_208 = arith.constant 1.000000e+00 : f32
    %340 = vector.broadcast %cst_208 : f32 to vector<2x4xf32>
    %341 = arith.addf %340, %339 : vector<2x4xf32>
    %342 = arith.divf %340, %341 : vector<2x4xf32>
    %343 = arith.mulf %332, %312 : vector<2x4xf32>
    %344 = arith.mulf %325, %335 : vector<2x4xf32>
    %345 = arith.addf %343, %344 : vector<2x4xf32>
    %346 = math.tanh %345 : vector<2x4xf32>
    %347 = arith.mulf %342, %346 : vector<2x4xf32>
    %c4_209 = arith.constant 4 : index
    %c0_210 = arith.constant 0 : index
    %c0_211 = arith.constant 0 : index
    %348 = vector.load %arg4[%c4_209, %c0_210, %c0_211] : memref<8x4x8xf32, #tpu.memory_space<vmem>>, vector<1x4x8xf32>
    %349 = vector.shape_cast %348 : vector<1x4x8xf32> to vector<4x8xf32>
    %cst_212 = arith.constant dense<0.000000e+00> : vector<2x8xf32>
    %350 = tpu.matmul %347, %349, %cst_212 {dimension_numbers = #tpu.dot_dimension_numbers<[1], [0], [0], [1], [0, 0, 1, 1], [], []>} : vector<2x4xf32>, vector<4x8xf32>, vector<2x8xf32> -> vector<2x8xf32>
    %351 = arith.addf %318, %350 : vector<2x8xf32>
    %cst_213 = arith.constant dense<0.000000e+00> : vector<2x4xf32>
    %352 = tpu.matmul %347, %9, %cst_213 {dimension_numbers = #tpu.dot_dimension_numbers<[1], [0], [0], [1], [0, 0, 1, 1], [], []>} : vector<2x4xf32>, vector<4x4xf32>, vector<2x4xf32> -> vector<2x4xf32>
    %353 = arith.addf %53, %352 : vector<2x4xf32>
    %354 = arith.negf %353 : vector<2x4xf32>
    %355 = math.exp %354 : vector<2x4xf32>
    %cst_214 = arith.constant 1.000000e+00 : f32
    %356 = vector.broadcast %cst_214 : f32 to vector<2x4xf32>
    %357 = arith.addf %356, %355 : vector<2x4xf32>
    %358 = arith.divf %356, %357 : vector<2x4xf32>
    %cst_215 = arith.constant dense<0.000000e+00> : vector<2x4xf32>
    %359 = tpu.matmul %347, %11, %cst_215 {dimension_numbers = #tpu.dot_dimension_numbers<[1], [0], [0], [1], [0, 0, 1, 1], [], []>} : vector<2x4xf32>, vector<4x4xf32>, vector<2x4xf32> -> vector<2x4xf32>
    %360 = arith.addf %93, %359 : vector<2x4xf32>
    %361 = arith.negf %360 : vector<2x4xf32>
    %362 = math.exp %361 : vector<2x4xf32>
    %cst_216 = arith.constant 1.000000e+00 : f32
    %363 = vector.broadcast %cst_216 : f32 to vector<2x4xf32>
    %364 = arith.addf %363, %362 : vector<2x4xf32>
    %365 = arith.divf %363, %364 : vector<2x4xf32>
    %cst_217 = arith.constant dense<0.000000e+00> : vector<2x4xf32>
    %366 = tpu.matmul %347, %13, %cst_217 {dimension_numbers = #tpu.dot_dimension_numbers<[1], [0], [0], [1], [0, 0, 1, 1], [], []>} : vector<2x4xf32>, vector<4x4xf32>, vector<2x4xf32> -> vector<2x4xf32>
    %367 = arith.addf %133, %366 : vector<2x4xf32>
    %368 = math.tanh %367 : vector<2x4xf32>
    %cst_218 = arith.constant dense<0.000000e+00> : vector<2x4xf32>
    %369 = tpu.matmul %347, %15, %cst_218 {dimension_numbers = #tpu.dot_dimension_numbers<[1], [0], [0], [1], [0, 0, 1, 1], [], []>} : vector<2x4xf32>, vector<4x4xf32>, vector<2x4xf32> -> vector<2x4xf32>
    %370 = arith.addf %173, %369 : vector<2x4xf32>
    %371 = arith.negf %370 : vector<2x4xf32>
    %372 = math.exp %371 : vector<2x4xf32>
    %cst_219 = arith.constant 1.000000e+00 : f32
    %373 = vector.broadcast %cst_219 : f32 to vector<2x4xf32>
    %374 = arith.addf %373, %372 : vector<2x4xf32>
    %375 = arith.divf %373, %374 : vector<2x4xf32>
    %376 = arith.mulf %365, %345 : vector<2x4xf32>
    %377 = arith.mulf %358, %368 : vector<2x4xf32>
    %378 = arith.addf %376, %377 : vector<2x4xf32>
    %379 = math.tanh %378 : vector<2x4xf32>
    %380 = arith.mulf %375, %379 : vector<2x4xf32>
    %c5_220 = arith.constant 5 : index
    %c0_221 = arith.constant 0 : index
    %c0_222 = arith.constant 0 : index
    %381 = vector.load %arg4[%c5_220, %c0_221, %c0_222] : memref<8x4x8xf32, #tpu.memory_space<vmem>>, vector<1x4x8xf32>
    %382 = vector.shape_cast %381 : vector<1x4x8xf32> to vector<4x8xf32>
    %cst_223 = arith.constant dense<0.000000e+00> : vector<2x8xf32>
    %383 = tpu.matmul %380, %382, %cst_223 {dimension_numbers = #tpu.dot_dimension_numbers<[1], [0], [0], [1], [0, 0, 1, 1], [], []>} : vector<2x4xf32>, vector<4x8xf32>, vector<2x8xf32> -> vector<2x8xf32>
    %384 = arith.addf %351, %383 : vector<2x8xf32>
    %cst_224 = arith.constant dense<0.000000e+00> : vector<2x4xf32>
    %385 = tpu.matmul %380, %9, %cst_224 {dimension_numbers = #tpu.dot_dimension_numbers<[1], [0], [0], [1], [0, 0, 1, 1], [], []>} : vector<2x4xf32>, vector<4x4xf32>, vector<2x4xf32> -> vector<2x4xf32>
    %386 = arith.addf %58, %385 : vector<2x4xf32>
    %387 = arith.negf %386 : vector<2x4xf32>
    %388 = math.exp %387 : vector<2x4xf32>
    %cst_225 = arith.constant 1.000000e+00 : f32
    %389 = vector.broadcast %cst_225 : f32 to vector<2x4xf32>
    %390 = arith.addf %389, %388 : vector<2x4xf32>
    %391 = arith.divf %389, %390 : vector<2x4xf32>
    %cst_226 = arith.constant dense<0.000000e+00> : vector<2x4xf32>
    %392 = tpu.matmul %380, %11, %cst_226 {dimension_numbers = #tpu.dot_dimension_numbers<[1], [0], [0], [1], [0, 0, 1, 1], [], []>} : vector<2x4xf32>, vector<4x4xf32>, vector<2x4xf32> -> vector<2x4xf32>
    %393 = arith.addf %98, %392 : vector<2x4xf32>
    %394 = arith.negf %393 : vector<2x4xf32>
    %395 = math.exp %394 : vector<2x4xf32>
    %cst_227 = arith.constant 1.000000e+00 : f32
    %396 = vector.broadcast %cst_227 : f32 to vector<2x4xf32>
    %397 = arith.addf %396, %395 : vector<2x4xf32>
    %398 = arith.divf %396, %397 : vector<2x4xf32>
    %cst_228 = arith.constant dense<0.000000e+00> : vector<2x4xf32>
    %399 = tpu.matmul %380, %13, %cst_228 {dimension_numbers = #tpu.dot_dimension_numbers<[1], [0], [0], [1], [0, 0, 1, 1], [], []>} : vector<2x4xf32>, vector<4x4xf32>, vector<2x4xf32> -> vector<2x4xf32>
    %400 = arith.addf %138, %399 : vector<2x4xf32>
    %401 = math.tanh %400 : vector<2x4xf32>
    %cst_229 = arith.constant dense<0.000000e+00> : vector<2x4xf32>
    %402 = tpu.matmul %380, %15, %cst_229 {dimension_numbers = #tpu.dot_dimension_numbers<[1], [0], [0], [1], [0, 0, 1, 1], [], []>} : vector<2x4xf32>, vector<4x4xf32>, vector<2x4xf32> -> vector<2x4xf32>
    %403 = arith.addf %178, %402 : vector<2x4xf32>
    %404 = arith.negf %403 : vector<2x4xf32>
    %405 = math.exp %404 : vector<2x4xf32>
    %cst_230 = arith.constant 1.000000e+00 : f32
    %406 = vector.broadcast %cst_230 : f32 to vector<2x4xf32>
    %407 = arith.addf %406, %405 : vector<2x4xf32>
    %408 = arith.divf %406, %407 : vector<2x4xf32>
    %409 = arith.mulf %398, %378 : vector<2x4xf32>
    %410 = arith.mulf %391, %401 : vector<2x4xf32>
    %411 = arith.addf %409, %410 : vector<2x4xf32>
    %412 = math.tanh %411 : vector<2x4xf32>
    %413 = arith.mulf %408, %412 : vector<2x4xf32>
    %c6_231 = arith.constant 6 : index
    %c0_232 = arith.constant 0 : index
    %c0_233 = arith.constant 0 : index
    %414 = vector.load %arg4[%c6_231, %c0_232, %c0_233] : memref<8x4x8xf32, #tpu.memory_space<vmem>>, vector<1x4x8xf32>
    %415 = vector.shape_cast %414 : vector<1x4x8xf32> to vector<4x8xf32>
    %cst_234 = arith.constant dense<0.000000e+00> : vector<2x8xf32>
    %416 = tpu.matmul %413, %415, %cst_234 {dimension_numbers = #tpu.dot_dimension_numbers<[1], [0], [0], [1], [0, 0, 1, 1], [], []>} : vector<2x4xf32>, vector<4x8xf32>, vector<2x8xf32> -> vector<2x8xf32>
    %417 = arith.addf %384, %416 : vector<2x8xf32>
    %cst_235 = arith.constant dense<0.000000e+00> : vector<2x4xf32>
    %418 = tpu.matmul %413, %9, %cst_235 {dimension_numbers = #tpu.dot_dimension_numbers<[1], [0], [0], [1], [0, 0, 1, 1], [], []>} : vector<2x4xf32>, vector<4x4xf32>, vector<2x4xf32> -> vector<2x4xf32>
    %419 = arith.addf %63, %418 : vector<2x4xf32>
    %420 = arith.negf %419 : vector<2x4xf32>
    %421 = math.exp %420 : vector<2x4xf32>
    %cst_236 = arith.constant 1.000000e+00 : f32
    %422 = vector.broadcast %cst_236 : f32 to vector<2x4xf32>
    %423 = arith.addf %422, %421 : vector<2x4xf32>
    %424 = arith.divf %422, %423 : vector<2x4xf32>
    %cst_237 = arith.constant dense<0.000000e+00> : vector<2x4xf32>
    %425 = tpu.matmul %413, %11, %cst_237 {dimension_numbers = #tpu.dot_dimension_numbers<[1], [0], [0], [1], [0, 0, 1, 1], [], []>} : vector<2x4xf32>, vector<4x4xf32>, vector<2x4xf32> -> vector<2x4xf32>
    %426 = arith.addf %103, %425 : vector<2x4xf32>
    %427 = arith.negf %426 : vector<2x4xf32>
    %428 = math.exp %427 : vector<2x4xf32>
    %cst_238 = arith.constant 1.000000e+00 : f32
    %429 = vector.broadcast %cst_238 : f32 to vector<2x4xf32>
    %430 = arith.addf %429, %428 : vector<2x4xf32>
    %431 = arith.divf %429, %430 : vector<2x4xf32>
    %cst_239 = arith.constant dense<0.000000e+00> : vector<2x4xf32>
    %432 = tpu.matmul %413, %13, %cst_239 {dimension_numbers = #tpu.dot_dimension_numbers<[1], [0], [0], [1], [0, 0, 1, 1], [], []>} : vector<2x4xf32>, vector<4x4xf32>, vector<2x4xf32> -> vector<2x4xf32>
    %433 = arith.addf %143, %432 : vector<2x4xf32>
    %434 = math.tanh %433 : vector<2x4xf32>
    %cst_240 = arith.constant dense<0.000000e+00> : vector<2x4xf32>
    %435 = tpu.matmul %413, %15, %cst_240 {dimension_numbers = #tpu.dot_dimension_numbers<[1], [0], [0], [1], [0, 0, 1, 1], [], []>} : vector<2x4xf32>, vector<4x4xf32>, vector<2x4xf32> -> vector<2x4xf32>
    %436 = arith.addf %183, %435 : vector<2x4xf32>
    %437 = arith.negf %436 : vector<2x4xf32>
    %438 = math.exp %437 : vector<2x4xf32>
    %cst_241 = arith.constant 1.000000e+00 : f32
    %439 = vector.broadcast %cst_241 : f32 to vector<2x4xf32>
    %440 = arith.addf %439, %438 : vector<2x4xf32>
    %441 = arith.divf %439, %440 : vector<2x4xf32>
    %442 = arith.mulf %431, %411 : vector<2x4xf32>
    %443 = arith.mulf %424, %434 : vector<2x4xf32>
    %444 = arith.addf %442, %443 : vector<2x4xf32>
    %445 = math.tanh %444 : vector<2x4xf32>
    %446 = arith.mulf %441, %445 : vector<2x4xf32>
    %c7_242 = arith.constant 7 : index
    %c0_243 = arith.constant 0 : index
    %c0_244 = arith.constant 0 : index
    %447 = vector.load %arg4[%c7_242, %c0_243, %c0_244] : memref<8x4x8xf32, #tpu.memory_space<vmem>>, vector<1x4x8xf32>
    %448 = vector.shape_cast %447 : vector<1x4x8xf32> to vector<4x8xf32>
    %cst_245 = arith.constant dense<0.000000e+00> : vector<2x8xf32>
    %449 = tpu.matmul %446, %448, %cst_245 {dimension_numbers = #tpu.dot_dimension_numbers<[1], [0], [0], [1], [0, 0, 1, 1], [], []>} : vector<2x4xf32>, vector<4x8xf32>, vector<2x8xf32> -> vector<2x8xf32>
    %450 = arith.addf %417, %449 : vector<2x8xf32>
    %c0_246 = arith.constant 0 : index
    %c0_247 = arith.constant 0 : index
    %451 = vector.load %arg5[%c0_246, %c0_247] : memref<1x8xf32, #tpu.memory_space<vmem>>, vector<1x8xf32>
    %452 = vector.broadcast %451 : vector<1x8xf32> to vector<2x8xf32>
    %453 = arith.addf %450, %452 : vector<2x8xf32>
    %cst_248 = arith.constant dense<0xFF800000> : vector<2xf32>
    %454 = vector.multi_reduction <maximumf>, %453, %cst_248 [1] : vector<2x8xf32> to vector<2xf32>
    %455 = vector.shape_cast %454 : vector<2xf32> to vector<2x1xf32>
    %456 = vector.broadcast %455 : vector<2x1xf32> to vector<2x8xf32>
    %457 = arith.subf %453, %456 : vector<2x8xf32>
    %458 = math.exp %457 : vector<2x8xf32>
    %cst_249 = arith.constant dense<0.000000e+00> : vector<2xf32>
    %459 = vector.multi_reduction <add>, %458, %cst_249 [1] : vector<2x8xf32> to vector<2xf32>
    %460 = vector.shape_cast %459 : vector<2xf32> to vector<2x1xf32>
    %461 = tpu.reciprocal %460 {approx = true} : vector<2x1xf32> -> vector<2x1xf32>
    %462 = vector.broadcast %461 : vector<2x1xf32> to vector<2x8xf32>
    %463 = arith.mulf %458, %462 : vector<2x8xf32>
    %c0_250 = arith.constant 0 : index
    %c0_251 = arith.constant 0 : index
    %464 = vector.load %arg6[%c0_250, %c0_251] : memref<2x8xf32, #tpu.memory_space<vmem>>, vector<2x8xf32>
    tpu.vector_store %arg6[%c0_250, %c0_251], %463 {strides = array<i32>} : memref<2x8xf32, #tpu.memory_space<vmem>>, vector<2x8xf32>,
    return
  }
}

</mosaic_0001>

<bundles_post_ra>
// kernel: erin_forward.1
= control target key start
LH: loop header
LB: loop body
LE: loop exit
PB: predicated region body
PF: predicated region fallthrough
CT: control target
= control target key end

     0   :  { %v6627_v1 = vmov 0.0   ;;  %vm64_vm0 = vcmask 261120   ;;  %vm6628_vm1 = vmmov 0   ;;  %s7598_s0 = inlined_call_operand.vmem [shape: f32[8,2,32], index: 0, kind: input, shape index: {}]   ;;  %s7599_s1 = inlined_call_operand.vmem [shape: f32[4,32,4], index: 1, kind: input, shape index: {}]   ;;  %s7600_s2 = inlined_call_operand.vmem [shape: f32[4,4,4], index: 2, kind: input, shape index: {}]   ;;  %s7601_s3 = inlined_call_operand.vmem [shape: f32[4,1,4], index: 3, kind: input, shape index: {}]   ;;  %s7602_s4 = inlined_call_operand.vmem [shape: f32[8,4,8], index: 4, kind: input, shape index: {}]   ;;  %s7603_s5 = inlined_call_operand.vmem [shape: f32[1,8], index: 5, kind: input, shape index: {}]   ;;  %s7604_s6 = inlined_call_operand.hbm [shape: f32[2,8], index: 6, kind: output, shape index: {}]  }
   0x1   :  { %v6668_v0 = vld [vmem:[%s7599_s1 + $0x18] sm:$0xff]  ;;  %5915 = vmatprep.subr.mxu0 %v6627_v1  ;;  %5926 = vmatprep.subr.mxu1 %v6627_v1  ;;  %v6675_v2 = vld [vmem:[%s7599_s1 + $0x10] sm:$0xff]  ;;  %v6684_v3 = vld [vmem:[%s7599_s1 + $0x8] sm:$0xff] }
   0x2   :  { %5916 = vmatpush3.msra.mxu0 %v6668_v0  ;;  %5927 = vmatpush3.msra.mxu1 %v6668_v0  ;;  %v6693_v4 = vld [vmem:[%s7599_s1] sm:$0xff] }
   0x3   :  { %5917 = vmatprep.subr.mxu0 %v6627_v1  ;;  %5928 = vmatprep.subr.mxu1 %v6627_v1  ;;  %v6702_v5 = vld [vmem:[%s7598_s0] sm:$0x3]  ;;  %v6707_v6 = vld [vmem:[%s7598_s0 + $0x2] sm:$0x3] }
   0x4   :  { %5918 = vmatpush3.msra.mxu0 %v6675_v2  ;;  %5929 = vmatpush3.msra.mxu1 %v6675_v2 }
   0x5   :  { %5919 = vmatprep.subr.mxu0 %v6627_v1  ;;  %5930 = vmatprep.subr.mxu1 %v6627_v1 }
   0x6   :  { %5920 = vmatpush3.msra.mxu0 %v6684_v3  ;;  %5931 = vmatpush3.msra.mxu1 %v6684_v3 }
   0x7   :  { %5921 = vmatprep.subr.mxu0 %v6627_v1  ;;  %5932 = vmatprep.subr.mxu1 %v6627_v1 }
   0x8   :  { %5922 = vmatpush3.msra.mxu0 %v6693_v4  ;;  %5923 = vmatprep.mubr.msk.f32.mxu0 %vm6628_vm1, %v6627_v1 }
   0x9   :  { %11 = vsyncpa [#allocation3], 0  ;;  %5933 = vmatpush3.msra.mxu1 %v6693_v4  ;;  %5934 = vmatprep.mubr.msk.f32.mxu1 %vm6628_vm1, %v6627_v1  ;;  %v6736_v7 = vld [vmem:[%s7598_s0 + $0x4] sm:$0x3]  ;;  %v6741_v8 = vld [vmem:[%s7598_s0 + $0x6] sm:$0x3] }
   0xa   :  { %5924 = vmatmul.mubr.msk.f32.vlgmr.msra.gmra.mxu0 %vm64_vm0, %v6702_v5  ;;  %5935 = vmatmul.mubr.msk.f32.vlgmr.msra.gmra.mxu1 %vm64_vm0, %v6707_v6  ;;  %v6770_v9 = vld [vmem:[%s7598_s0 + $0x8] sm:$0x3]  ;;  %v6775_v10 = vld [vmem:[%s7598_s0 + $0xa] sm:$0x3]  ;;  %v6804_v11 = vld [vmem:[%s7598_s0 + $0xc] sm:$0x3] }
   0xb   :  { %5937 = vmatprep.subr.mxu0 %v6627_v1  ;;  %5948 = vmatprep.subr.mxu1 %v6627_v1  ;;  %v6809_v12 = vld [vmem:[%s7598_s0 + $0xe] sm:$0x3]  ;;  %v6820_v13 = vld [vmem:[%s7599_s1 + $0x38] sm:$0xff]  ;;  %v6831_v14 = vld [vmem:[%s7599_s1 + $0x30] sm:$0xff]  ;;  %vm2365_vm2 = vcmask 1043456   ;;  %vm2361_vm3 = vcmask 31744  }
   0xc   :  { %5938 = vmatpush3.msra.mxu0 %v6668_v0  ;;  %5949 = vmatpush3.msra.mxu1 %v6668_v0  ;;  %v6840_v15 = vld [vmem:[%s7599_s1 + $0x28] sm:$0xff]  ;;  %v6849_v16 = vld [vmem:[%s7599_s1 + $0x20] sm:$0xff]  ;;  %v6936_v17 = vld [vmem:[%s7599_s1 + $0x58] sm:$0xff]  ;;  %vm5479_vm4 = vcmask 58368   ;;  %s6629_s29 = smov [#allocation2]  }
   0xd   :  { %5939 = vmatprep.subr.mxu0 %v6627_v1  ;;  %5950 = vmatprep.subr.mxu1 %v6627_v1  ;;  %v6947_v18 = vld [vmem:[%s7599_s1 + $0x50] sm:$0xff]  ;;  %v6956_v19 = vld [vmem:[%s7599_s1 + $0x48] sm:$0xff]  ;;  %v6965_v20 = vld [vmem:[%s7599_s1 + $0x40] sm:$0xff]  ;;  %s5498_s30 = sshll.u32 %s6629_s29, 4  ;;  %s5499_s30 = int_to_ptr.vmem [resolvable:$true] %s5498_s30 }
   0xe   :  { %5940 = vmatpush3.msra.mxu0 %v6675_v2  ;;  %5951 = vmatpush3.msra.mxu1 %v6675_v2  ;;  %v7052_v21 = vld [vmem:[%s7599_s1 + $0x78] sm:$0xff]  ;;  %v7063_v22 = vld [vmem:[%s7599_s1 + $0x70] sm:$0xff]  ;;  %v7072_v23 = vld [vmem:[%s7599_s1 + $0x68] sm:$0xff]  ;;  %p6610_p1 = scmp.lt.s32.totalorder %s5499_s30, %s5499_s30 }
   0xf   :  { %5941 = vmatprep.subr.mxu0 %v6627_v1  ;;  %5952 = vmatprep.subr.mxu1 %v6627_v1  ;;  %v7081_v24 = vld [vmem:[%s7599_s1 + $0x60] sm:$0xff]  ;;  %v7192_v27 = vld [vmem:[%s7600_s2 + $0x8] sm:$0xf]  ;;  %v7199_v28 = vld [vmem:[%s7600_s2 + $0xc] sm:$0xf] }
  0x10   :  { %5942 = vmatpush3.msra.mxu0 %v6684_v3  ;;  %5953 = vmatpush3.msra.mxu1 %v6684_v3  ;;  %v7168_v25 = vld [vmem:[%s7600_s2] sm:$0xf]  ;;  %v7173_v26 = vld [vmem:[%s7600_s2 + $0x4] sm:$0xf] }
  0x11   :  { %5943 = vmatprep.subr.mxu0 %v6627_v1  ;;  %5954 = vmatprep.subr.mxu1 %v6627_v1  ;;  %v7228_v29 = vld [vmem:[%s7601_s3] ss:$0 sm:$0xff]  ;;  %v7256_v53 = vld [vmem:[%s7601_s3 + $0x1] ss:$0 sm:$0xff] }
  0x12   :  { %5944 = vmatpush3.msra.mxu0 %v6693_v4  ;;  %5945 = vmatprep.mubr.msk.f32.mxu0 %vm6628_vm1, %v6627_v1 }
  0x13   :  { %5955 = vmatpush3.msra.mxu1 %v6693_v4  ;;  %5956 = vmatprep.mubr.msk.f32.mxu1 %vm6628_vm1, %v6627_v1 }
  0x14   :  { %5946 = vmatmul.mubr.msk.f32.vlgmr.msra.gmra.mxu0 %vm64_vm0, %v6736_v7  ;;  %5957 = vmatmul.mubr.msk.f32.vlgmr.msra.gmra.mxu1 %vm64_vm0, %v6741_v8 }
  0x15   :  { %5959 = vmatprep.subr.mxu0 %v6627_v1  ;;  %5970 = vmatprep.subr.mxu1 %v6627_v1 }
  0x16   :  { %5960 = vmatpush3.msra.mxu0 %v6668_v0  ;;  %5971 = vmatpush3.msra.mxu1 %v6668_v0 }
  0x17   :  { %5961 = vmatprep.subr.mxu0 %v6627_v1  ;;  %5972 = vmatprep.subr.mxu1 %v6627_v1 }
  0x18   :  { %5962 = vmatpush3.msra.mxu0 %v6675_v2  ;;  %5973 = vmatpush3.msra.mxu1 %v6675_v2 }
  0x19   :  { %5963 = vmatprep.subr.mxu0 %v6627_v1  ;;  %5974 = vmatprep.subr.mxu1 %v6627_v1 }
  0x1a   :  { %5964 = vmatpush3.msra.mxu0 %v6684_v3  ;;  %5975 = vmatpush3.msra.mxu1 %v6684_v3 }
  0x1b   :  { %5965 = vmatprep.subr.mxu0 %v6627_v1  ;;  %5976 = vmatprep.subr.mxu1 %v6627_v1 }
  0x1c   :  { %5966 = vmatpush3.msra.mxu0 %v6693_v4  ;;  %5967 = vmatprep.mubr.msk.f32.mxu0 %vm6628_vm1, %v6627_v1 }
  0x1d   :  { %5977 = vmatpush3.msra.mxu1 %v6693_v4  ;;  %5978 = vmatprep.mubr.msk.f32.mxu1 %vm6628_vm1, %v6627_v1 }
  0x1e   :  { %5968 = vmatmul.mubr.msk.f32.vlgmr.msra.gmra.mxu0 %vm64_vm0, %v6770_v9  ;;  %5979 = vmatmul.mubr.msk.f32.vlgmr.msra.gmra.mxu1 %vm64_vm0, %v6775_v10 }
  0x1f   :  { %5981 = vmatprep.subr.mxu0 %v6627_v1  ;;  %5992 = vmatprep.subr.mxu1 %v6627_v1 }
  0x20   :  { %5982 = vmatpush3.msra.mxu0 %v6668_v0  ;;  %5993 = vmatpush3.msra.mxu1 %v6668_v0 }
  0x21   :  { %5983 = vmatprep.subr.mxu0 %v6627_v1  ;;  %5994 = vmatprep.subr.mxu1 %v6627_v1 }
  0x22   :  { %5984 = vmatpush3.msra.mxu0 %v6675_v2  ;;  %5995 = vmatpush3.msra.mxu1 %v6675_v2 }
  0x23   :  { %5985 = vmatprep.subr.mxu0 %v6627_v1  ;;  %5996 = vmatprep.subr.mxu1 %v6627_v1 }
  0x24   :  { %5986 = vmatpush3.msra.mxu0 %v6684_v3  ;;  %5997 = vmatpush3.msra.mxu1 %v6684_v3 }
  0x25   :  { %5987 = vmatprep.subr.mxu0 %v6627_v1  ;;  %5998 = vmatprep.subr.mxu1 %v6627_v1 }
  0x26   :  { %5988 = vmatpush3.msra.mxu0 %v6693_v4  ;;  %5989 = vmatprep.mubr.msk.f32.mxu0 %vm6628_vm1, %v6627_v1 }
  0x27   :  { %5999 = vmatpush3.msra.mxu1 %v6693_v4  ;;  %6000 = vmatprep.mubr.msk.f32.mxu1 %vm6628_vm1, %v6627_v1 }
  0x28   :  { %5990 = vmatmul.mubr.msk.f32.vlgmr.msra.gmra.mxu0 %vm64_vm0, %v6804_v11  ;;  %6001 = vmatmul.mubr.msk.f32.vlgmr.msra.gmra.mxu1 %vm64_vm0, %v6809_v12 }
  0x29   :  { %6003 = vmatprep.subr.mxu0 %v6627_v1  ;;  %6014 = vmatprep.subr.mxu1 %v6627_v1 }
  0x2a   :  { %6004 = vmatpush3.msra.mxu0 %v6820_v13  ;;  %6015 = vmatpush3.msra.mxu1 %v6820_v13 }
  0x2b   :  { %6005 = vmatprep.subr.mxu0 %v6627_v1  ;;  %6016 = vmatprep.subr.mxu1 %v6627_v1 }
  0x2c   :  { %6006 = vmatpush3.msra.mxu0 %v6831_v14  ;;  %6017 = vmatpush3.msra.mxu1 %v6831_v14 }
  0x2d   :  { %6007 = vmatprep.subr.mxu0 %v6627_v1  ;;  %6018 = vmatprep.subr.mxu1 %v6627_v1 }
  0x2e   :  { %6008 = vmatpush3.msra.mxu0 %v6840_v15  ;;  %6019 = vmatpush3.msra.mxu1 %v6840_v15 }
  0x2f   :  { %6009 = vmatprep.subr.mxu0 %v6627_v1  ;;  %6020 = vmatprep.subr.mxu1 %v6627_v1 }
  0x30   :  { %6010 = vmatpush3.msra.mxu0 %v6849_v16  ;;  %6011 = vmatprep.mubr.msk.f32.mxu0 %vm6628_vm1, %v6627_v1 }
  0x31   :  { %6021 = vmatpush3.msra.mxu1 %v6849_v16  ;;  %6022 = vmatprep.mubr.msk.f32.mxu1 %vm6628_vm1, %v6627_v1 }
  0x32   :  { %6012 = vmatmul.mubr.msk.f32.vlgmr.msra.gmra.mxu0 %vm64_vm0, %v6702_v5  ;;  %6023 = vmatmul.mubr.msk.f32.vlgmr.msra.gmra.mxu1 %vm64_vm0, %v6707_v6 }
  0x33   :  { %6025 = vmatprep.subr.mxu0 %v6627_v1  ;;  %6036 = vmatprep.subr.mxu1 %v6627_v1 }
  0x34   :  { %6026 = vmatpush3.msra.mxu0 %v6820_v13  ;;  %6037 = vmatpush3.msra.mxu1 %v6820_v13 }
  0x35   :  { %6027 = vmatprep.subr.mxu0 %v6627_v1  ;;  %6038 = vmatprep.subr.mxu1 %v6627_v1 }
  0x36   :  { %6028 = vmatpush3.msra.mxu0 %v6831_v14  ;;  %6039 = vmatpush3.msra.mxu1 %v6831_v14 }
  0x37   :  { %6029 = vmatprep.subr.mxu0 %v6627_v1  ;;  %6040 = vmatprep.subr.mxu1 %v6627_v1 }
  0x38   :  { %6030 = vmatpush3.msra.mxu0 %v6840_v15  ;;  %6041 = vmatpush3.msra.mxu1 %v6840_v15 }
  0x39   :  { %6031 = vmatprep.subr.mxu0 %v6627_v1  ;;  %6042 = vmatprep.subr.mxu1 %v6627_v1 }
  0x3a   :  { %6032 = vmatpush3.msra.mxu0 %v6849_v16  ;;  %6033 = vmatprep.mubr.msk.f32.mxu0 %vm6628_vm1, %v6627_v1 }
  0x3b   :  { %6043 = vmatpush3.msra.mxu1 %v6849_v16  ;;  %6044 = vmatprep.mubr.msk.f32.mxu1 %vm6628_vm1, %v6627_v1 }
  0x3c   :  { %6034 = vmatmul.mubr.msk.f32.vlgmr.msra.gmra.mxu0 %vm64_vm0, %v6736_v7  ;;  %6045 = vmatmul.mubr.msk.f32.vlgmr.msra.gmra.mxu1 %vm64_vm0, %v6741_v8 }
  0x3d   :  { %6047 = vmatprep.subr.mxu0 %v6627_v1  ;;  %6058 = vmatprep.subr.mxu1 %v6627_v1 }
  0x3e   :  { %6048 = vmatpush3.msra.mxu0 %v6820_v13  ;;  %6059 = vmatpush3.msra.mxu1 %v6820_v13 }
  0x3f   :  { %6049 = vmatprep.subr.mxu0 %v6627_v1  ;;  %6060 = vmatprep.subr.mxu1 %v6627_v1 }
  0x40   :  { %6050 = vmatpush3.msra.mxu0 %v6831_v14  ;;  %6061 = vmatpush3.msra.mxu1 %v6831_v14 }
  0x41   :  { %6051 = vmatprep.subr.mxu0 %v6627_v1  ;;  %6062 = vmatprep.subr.mxu1 %v6627_v1 }
  0x42   :  { %6052 = vmatpush3.msra.mxu0 %v6840_v15  ;;  %6063 = vmatpush3.msra.mxu1 %v6840_v15 }
  0x43   :  { %6053 = vmatprep.subr.mxu0 %v6627_v1  ;;  %6064 = vmatprep.subr.mxu1 %v6627_v1 }
  0x44   :  { %6054 = vmatpush3.msra.mxu0 %v6849_v16  ;;  %6055 = vmatprep.mubr.msk.f32.mxu0 %vm6628_vm1, %v6627_v1 }
  0x45   :  { %6065 = vmatpush3.msra.mxu1 %v6849_v16  ;;  %6066 = vmatprep.mubr.msk.f32.mxu1 %vm6628_vm1, %v6627_v1 }
  0x46   :  { %6056 = vmatmul.mubr.msk.f32.vlgmr.msra.gmra.mxu0 %vm64_vm0, %v6770_v9  ;;  %6067 = vmatmul.mubr.msk.f32.vlgmr.msra.gmra.mxu1 %vm64_vm0, %v6775_v10 }
  0x47   :  { %6069 = vmatprep.subr.mxu0 %v6627_v1  ;;  %6080 = vmatprep.subr.mxu1 %v6627_v1 }
  0x48   :  { %6070 = vmatpush3.msra.mxu0 %v6820_v13  ;;  %6081 = vmatpush3.msra.mxu1 %v6820_v13 }
  0x49   :  { %6071 = vmatprep.subr.mxu0 %v6627_v1  ;;  %6082 = vmatprep.subr.mxu1 %v6627_v1 }
  0x4a   :  { %6072 = vmatpush3.msra.mxu0 %v6831_v14  ;;  %6083 = vmatpush3.msra.mxu1 %v6831_v14  ;;  %v7284_v14 = vld [vmem:[%s7601_s3 + $0x2] ss:$0 sm:$0xff] }
  0x4b   :  { %6073 = vmatprep.subr.mxu0 %v6627_v1  ;;  %6084 = vmatprep.subr.mxu1 %v6627_v1 }
  0x4c   :  { %6074 = vmatpush3.msra.mxu0 %v6840_v15  ;;  %6085 = vmatpush3.msra.mxu1 %v6840_v15 }
  0x4d   :  { %6075 = vmatprep.subr.mxu0 %v6627_v1  ;;  %6086 = vmatprep.subr.mxu1 %v6627_v1 }
  0x4e   :  { %6076 = vmatpush3.msra.mxu0 %v6849_v16  ;;  %6077 = vmatprep.mubr.msk.f32.mxu0 %vm6628_vm1, %v6627_v1 }
  0x4f   :  { %6087 = vmatpush3.msra.mxu1 %v6849_v16  ;;  %6088 = vmatprep.mubr.msk.f32.mxu1 %vm6628_vm1, %v6627_v1 }
  0x50   :  { %6078 = vmatmul.mubr.msk.f32.vlgmr.msra.gmra.mxu0 %vm64_vm0, %v6804_v11  ;;  %6089 = vmatmul.mubr.msk.f32.vlgmr.msra.gmra.mxu1 %vm64_vm0, %v6809_v12 }
  0x51   :  { %6091 = vmatprep.subr.mxu0 %v6627_v1  ;;  %6102 = vmatprep.subr.mxu1 %v6627_v1 }
  0x52   :  { %6092 = vmatpush3.msra.mxu0 %v6936_v17  ;;  %6103 = vmatpush3.msra.mxu1 %v6936_v17 }
  0x53   :  { %6093 = vmatprep.subr.mxu0 %v6627_v1  ;;  %6104 = vmatprep.subr.mxu1 %v6627_v1 }
  0x54   :  { %6094 = vmatpush3.msra.mxu0 %v6947_v18  ;;  %6105 = vmatpush3.msra.mxu1 %v6947_v18 }
  0x55   :  { %6095 = vmatprep.subr.mxu0 %v6627_v1  ;;  %6106 = vmatprep.subr.mxu1 %v6627_v1 }
  0x56   :  { %6096 = vmatpush3.msra.mxu0 %v6956_v19  ;;  %6107 = vmatpush3.msra.mxu1 %v6956_v19 }
  0x57   :  { %6097 = vmatprep.subr.mxu0 %v6627_v1  ;;  %6108 = vmatprep.subr.mxu1 %v6627_v1 }
  0x58   :  { %6098 = vmatpush3.msra.mxu0 %v6965_v20  ;;  %6099 = vmatprep.mubr.msk.f32.mxu0 %vm6628_vm1, %v6627_v1 }
  0x59   :  { %6109 = vmatpush3.msra.mxu1 %v6965_v20  ;;  %6110 = vmatprep.mubr.msk.f32.mxu1 %vm6628_vm1, %v6627_v1 }
  0x5a   :  { %6100 = vmatmul.mubr.msk.f32.vlgmr.msra.gmra.mxu0 %vm64_vm0, %v6702_v5  ;;  %6111 = vmatmul.mubr.msk.f32.vlgmr.msra.gmra.mxu1 %vm64_vm0, %v6707_v6 }
  0x5b   :  { %6113 = vmatprep.subr.mxu0 %v6627_v1  ;;  %6124 = vmatprep.subr.mxu1 %v6627_v1 }
  0x5c   :  { %6114 = vmatpush3.msra.mxu0 %v6936_v17  ;;  %6125 = vmatpush3.msra.mxu1 %v6936_v17 }
  0x5d   :  { %6115 = vmatprep.subr.mxu0 %v6627_v1  ;;  %6126 = vmatprep.subr.mxu1 %v6627_v1 }
  0x5e   :  { %6116 = vmatpush3.msra.mxu0 %v6947_v18  ;;  %6127 = vmatpush3.msra.mxu1 %v6947_v18 }
  0x5f   :  { %6117 = vmatprep.subr.mxu0 %v6627_v1  ;;  %6128 = vmatprep.subr.mxu1 %v6627_v1 }
  0x60   :  { %6118 = vmatpush3.msra.mxu0 %v6956_v19  ;;  %6129 = vmatpush3.msra.mxu1 %v6956_v19 }
  0x61   :  { %6119 = vmatprep.subr.mxu0 %v6627_v1  ;;  %6130 = vmatprep.subr.mxu1 %v6627_v1 }
  0x62   :  { %6120 = vmatpush3.msra.mxu0 %v6965_v20  ;;  %6121 = vmatprep.mubr.msk.f32.mxu0 %vm6628_vm1, %v6627_v1 }
  0x63   :  { %6131 = vmatpush3.msra.mxu1 %v6965_v20  ;;  %6132 = vmatprep.mubr.msk.f32.mxu1 %vm6628_vm1, %v6627_v1 }
  0x64   :  { %6122 = vmatmul.mubr.msk.f32.vlgmr.msra.gmra.mxu0 %vm64_vm0, %v6736_v7  ;;  %6133 = vmatmul.mubr.msk.f32.vlgmr.msra.gmra.mxu1 %vm64_vm0, %v6741_v8 }
  0x65   :  { %6135 = vmatprep.subr.mxu0 %v6627_v1  ;;  %6146 = vmatprep.subr.mxu1 %v6627_v1 }
  0x66   :  { %6136 = vmatpush3.msra.mxu0 %v6936_v17  ;;  %6147 = vmatpush3.msra.mxu1 %v6936_v17 }
  0x67   :  { %6137 = vmatprep.subr.mxu0 %v6627_v1  ;;  %6148 = vmatprep.subr.mxu1 %v6627_v1 }
  0x68   :  { %6138 = vmatpush3.msra.mxu0 %v6947_v18  ;;  %6149 = vmatpush3.msra.mxu1 %v6947_v18 }
  0x69   :  { %6139 = vmatprep.subr.mxu0 %v6627_v1  ;;  %6150 = vmatprep.subr.mxu1 %v6627_v1 }
  0x6a   :  { %6140 = vmatpush3.msra.mxu0 %v6956_v19  ;;  %6151 = vmatpush3.msra.mxu1 %v6956_v19 }
  0x6b   :  { %6141 = vmatprep.subr.mxu0 %v6627_v1  ;;  %6152 = vmatprep.subr.mxu1 %v6627_v1 }
  0x6c   :  { %6142 = vmatpush3.msra.mxu0 %v6965_v20  ;;  %6143 = vmatprep.mubr.msk.f32.mxu0 %vm6628_vm1, %v6627_v1 }
  0x6d   :  { %6153 = vmatpush3.msra.mxu1 %v6965_v20  ;;  %6154 = vmatprep.mubr.msk.f32.mxu1 %vm6628_vm1, %v6627_v1 }
  0x6e   :  { %6144 = vmatmul.mubr.msk.f32.vlgmr.msra.gmra.mxu0 %vm64_vm0, %v6770_v9  ;;  %6155 = vmatmul.mubr.msk.f32.vlgmr.msra.gmra.mxu1 %vm64_vm0, %v6775_v10 }
  0x6f   :  { %6157 = vmatprep.subr.mxu0 %v6627_v1  ;;  %6168 = vmatprep.subr.mxu1 %v6627_v1 }
  0x70   :  { %6158 = vmatpush3.msra.mxu0 %v6936_v17  ;;  %6169 = vmatpush3.msra.mxu1 %v6936_v17 }
  0x71   :  { %6159 = vmatprep.subr.mxu0 %v6627_v1  ;;  %6170 = vmatprep.subr.mxu1 %v6627_v1 }
  0x72   :  { %6160 = vmatpush3.msra.mxu0 %v6947_v18  ;;  %6171 = vmatpush3.msra.mxu1 %v6947_v18 }
  0x73   :  { %6161 = vmatprep.subr.mxu0 %v6627_v1  ;;  %6172 = vmatprep.subr.mxu1 %v6627_v1 }
  0x74   :  { %6162 = vmatpush3.msra.mxu0 %v6956_v19  ;;  %6173 = vmatpush3.msra.mxu1 %v6956_v19 }
  0x75   :  { %6163 = vmatprep.subr.mxu0 %v6627_v1  ;;  %6174 = vmatprep.subr.mxu1 %v6627_v1 }
  0x76   :  { %6164 = vmatpush3.msra.mxu0 %v6965_v20  ;;  %6165 = vmatprep.mubr.msk.f32.mxu0 %vm6628_vm1, %v6627_v1 }
  0x77   :  { %6175 = vmatpush3.msra.mxu1 %v6965_v20  ;;  %6176 = vmatprep.mubr.msk.f32.mxu1 %vm6628_vm1, %v6627_v1 }
  0x78   :  { %6166 = vmatmul.mubr.msk.f32.vlgmr.msra.gmra.mxu0 %vm64_vm0, %v6804_v11  ;;  %6177 = vmatmul.mubr.msk.f32.vlgmr.msra.gmra.mxu1 %vm64_vm0, %v6809_v12 }
  0x79   :  { %6179 = vmatprep.subr.mxu0 %v6627_v1  ;;  %6190 = vmatprep.subr.mxu1 %v6627_v1 }
  0x7a   :  { %6180 = vmatpush3.msra.mxu0 %v7052_v21  ;;  %6191 = vmatpush3.msra.mxu1 %v7052_v21 }
  0x7b   :  { %6181 = vmatprep.subr.mxu0 %v6627_v1  ;;  %6192 = vmatprep.subr.mxu1 %v6627_v1 }
  0x7c   :  { %6182 = vmatpush3.msra.mxu0 %v7063_v22  ;;  %6193 = vmatpush3.msra.mxu1 %v7063_v22 }
  0x7d   :  { %6183 = vmatprep.subr.mxu0 %v6627_v1  ;;  %6194 = vmatprep.subr.mxu1 %v6627_v1 }
  0x7e   :  { %6184 = vmatpush3.msra.mxu0 %v7072_v23  ;;  %6195 = vmatpush3.msra.mxu1 %v7072_v23 }
  0x7f   :  { %6185 = vmatprep.subr.mxu0 %v6627_v1  ;;  %6196 = vmatprep.subr.mxu1 %v6627_v1 }
  0x80   :  { %6186 = vmatpush3.msra.mxu0 %v7081_v24  ;;  %6187 = vmatprep.mubr.msk.f32.mxu0 %vm6628_vm1, %v6627_v1 }
  0x81   :  { %6197 = vmatpush3.msra.mxu1 %v7081_v24  ;;  %6198 = vmatprep.mubr.msk.f32.mxu1 %vm6628_vm1, %v6627_v1 }
  0x82   :  { %6188 = vmatmul.mubr.msk.f32.vlgmr.msra.gmra.mxu0 %vm64_vm0, %v6702_v5  ;;  %6199 = vmatmul.mubr.msk.f32.vlgmr.msra.gmra.mxu1 %vm64_vm0, %v6707_v6 }
  0x83   :  { %6201 = vmatprep.subr.mxu0 %v6627_v1  ;;  %6212 = vmatprep.subr.mxu1 %v6627_v1 }
  0x84   :  { %6202 = vmatpush3.msra.mxu0 %v7052_v21  ;;  %6213 = vmatpush3.msra.mxu1 %v7052_v21 }
  0x85   :  { %6203 = vmatprep.subr.mxu0 %v6627_v1  ;;  %6214 = vmatprep.subr.mxu1 %v6627_v1 }
  0x86   :  { %6204 = vmatpush3.msra.mxu0 %v7063_v22  ;;  %6215 = vmatpush3.msra.mxu1 %v7063_v22 }
  0x87   :  { %6205 = vmatprep.subr.mxu0 %v6627_v1  ;;  %6216 = vmatprep.subr.mxu1 %v6627_v1 }
  0x88   :  { %6206 = vmatpush3.msra.mxu0 %v7072_v23  ;;  %6217 = vmatpush3.msra.mxu1 %v7072_v23 }
  0x89   :  { %6207 = vmatprep.subr.mxu0 %v6627_v1  ;;  %6218 = vmatprep.subr.mxu1 %v6627_v1 }
  0x8a   :  { %6208 = vmatpush3.msra.mxu0 %v7081_v24  ;;  %6209 = vmatprep.mubr.msk.f32.mxu0 %vm6628_vm1, %v6627_v1 }
  0x8b   :  { %6219 = vmatpush3.msra.mxu1 %v7081_v24  ;;  %6220 = vmatprep.mubr.msk.f32.mxu1 %vm6628_vm1, %v6627_v1 }
  0x8c   :  { %6210 = vmatmul.mubr.msk.f32.vlgmr.msra.gmra.mxu0 %vm64_vm0, %v6736_v7  ;;  %6221 = vmatmul.mubr.msk.f32.vlgmr.msra.gmra.mxu1 %vm64_vm0, %v6741_v8 }
  0x8d   :  { %6223 = vmatprep.subr.mxu0 %v6627_v1  ;;  %6234 = vmatprep.subr.mxu1 %v6627_v1 }
  0x8e   :  { %6224 = vmatpush3.msra.mxu0 %v7052_v21  ;;  %6235 = vmatpush3.msra.mxu1 %v7052_v21 }
  0x8f   :  { %6225 = vmatprep.subr.mxu0 %v6627_v1  ;;  %6236 = vmatprep.subr.mxu1 %v6627_v1 }
  0x90   :  { %6226 = vmatpush3.msra.mxu0 %v7063_v22  ;;  %6237 = vmatpush3.msra.mxu1 %v7063_v22 }
  0x91   :  { %6227 = vmatprep.subr.mxu0 %v6627_v1  ;;  %6238 = vmatprep.subr.mxu1 %v6627_v1 }
  0x92   :  { %6228 = vmatpush3.msra.mxu0 %v7072_v23  ;;  %6239 = vmatpush3.msra.mxu1 %v7072_v23 }
  0x93   :  { %6229 = vmatprep.subr.mxu0 %v6627_v1  ;;  %6240 = vmatprep.subr.mxu1 %v6627_v1 }
  0x94   :  { %6230 = vmatpush3.msra.mxu0 %v7081_v24  ;;  %6231 = vmatprep.mubr.msk.f32.mxu0 %vm6628_vm1, %v6627_v1 }
  0x95   :  { %6241 = vmatpush3.msra.mxu1 %v7081_v24  ;;  %6242 = vmatprep.mubr.msk.f32.mxu1 %vm6628_vm1, %v6627_v1 }
  0x96   :  { %6232 = vmatmul.mubr.msk.f32.vlgmr.msra.gmra.mxu0 %vm64_vm0, %v6770_v9  ;;  %6243 = vmatmul.mubr.msk.f32.vlgmr.msra.gmra.mxu1 %vm64_vm0, %v6775_v10 }
  0x97   :  { %6245 = vmatprep.subr.mxu0 %v6627_v1  ;;  %6256 = vmatprep.subr.mxu1 %v6627_v1 }
  0x98   :  { %6246 = vmatpush3.msra.mxu0 %v7052_v21  ;;  %6257 = vmatpush3.msra.mxu1 %v7052_v21 }
  0x99   :  { %6247 = vmatprep.subr.mxu0 %v6627_v1  ;;  %6258 = vmatprep.subr.mxu1 %v6627_v1 }
  0x9a   :  { %6248 = vmatpush3.msra.mxu0 %v7063_v22  ;;  %6259 = vmatpush3.msra.mxu1 %v7063_v22 }
  0x9b   :  { %6249 = vmatprep.subr.mxu0 %v6627_v1  ;;  %6260 = vmatprep.subr.mxu1 %v6627_v1 }
  0x9c   :  { %6250 = vmatpush3.msra.mxu0 %v7072_v23  ;;  %6261 = vmatpush3.msra.mxu1 %v7072_v23 }
  0x9d   :  { %6251 = vmatprep.subr.mxu0 %v6627_v1  ;;  %6262 = vmatprep.subr.mxu1 %v6627_v1 }
  0x9e   :  { %6252 = vmatpush3.msra.mxu0 %v7081_v24  ;;  %6253 = vmatprep.mubr.msk.f32.mxu0 %vm6628_vm1, %v6627_v1 }
  0x9f   :  { %6263 = vmatpush3.msra.mxu1 %v7081_v24  ;;  %6264 = vmatprep.mubr.msk.f32.mxu1 %vm6628_vm1, %v6627_v1 }
  0xa0   :  { %6254 = vmatmul.mubr.msk.f32.vlgmr.msra.gmra.mxu0 %vm64_vm0, %v6804_v11  ;;  %6265 = vmatmul.mubr.msk.f32.vlgmr.msra.gmra.mxu1 %vm64_vm0, %v6809_v12 }
  0xa1   :  { %6267 = vmatprep.subr.mxu0 %v6627_v1  ;;  %6272 = vmatprep.subr.mxu1 %v6627_v1 }
  0xa2   :  { %6268 = vmatpush3.msk.msra.mxu0 %vm2365_vm2, %v7168_v25  ;;  %6273 = vmatpush3.msk.msra.mxu1 %vm2365_vm2, %v7173_v26 }
  0xa3   :  { %6269 = vmatprep.mubr.msk.f32.mxu0 %vm6628_vm1, %v6627_v1  ;;  %6274 = vmatprep.mubr.msk.f32.mxu1 %vm6628_vm1, %v6627_v1 }
  0xa4   :  { %6270 = vmatmul.mubr.f32.vlgmr.msra.gmra.mxu0 %v6627_v1  ;;  %6275 = vmatmul.mubr.f32.vlgmr.msra.gmra.mxu1 %v6627_v1 }
  0xa5   :  { %6277 = vmatprep.subr.mxu0 %v6627_v1  ;;  %6282 = vmatprep.subr.mxu1 %v6627_v1 }
  0xa6   :  { %6278 = vmatpush3.msk.msra.mxu0 %vm2365_vm2, %v7192_v27  ;;  %6279 = vmatprep.mubr.msk.f32.mxu0 %vm6628_vm1, %v6627_v1 }
  0xa7   :  { %6283 = vmatpush3.msk.msra.mxu1 %vm2365_vm2, %v7199_v28  ;;  %6284 = vmatprep.mubr.msk.f32.mxu1 %vm6628_vm1, %v6627_v1 }
  0xa8   :  { %6280 = vmatmul.mubr.f32.vlgmr.msra.gmra.mxu0 %v6627_v1  ;;  %6285 = vmatmul.mubr.f32.vlgmr.msra.gmra.mxu1 %v6627_v1 }
  0xa9   :  { %6287 = vmatprep.subr.mxu0 %v6627_v1  ;;  %6292 = vmatprep.subr.mxu1 %v6627_v1 }
  0xaa   :  { %6288 = vmatpush3.msk.msra.mxu0 %vm2365_vm2, %v7168_v25  ;;  %6293 = vmatpush3.msk.msra.mxu1 %vm2365_vm2, %v7173_v26 }
  0xab   :  { %6289 = vmatprep.mubr.msk.f32.mxu0 %vm6628_vm1, %v6627_v1  ;;  %6294 = vmatprep.mubr.msk.f32.mxu1 %vm6628_vm1, %v6627_v1 }
  0xac   :  { %6297 = vmatprep.subr.mxu0 %v6627_v1  ;;  %6302 = vmatprep.subr.mxu1 %v6627_v1 }
  0xca   :  { %v7230_v30 = vpop.f32.mrf.mxu0  ;;  %v209_v31 = vpop.f32.mrf.mxu1 }
  0xcb   :  { %v7233_v32 = vadd.f32 %v7228_v29, %v209_v31 }
  0xcc   :  { %v5925_v33 = vpop.f32.mrf.mxu0  ;;  %v5936_v34 = vpop.f32.mrf.mxu1 }
  0xd4   :  { %v284_v35 = vpop.f32.mrf.mxu0  ;;  %v359_v36 = vpop.f32.mrf.mxu1 }
  0xd5   :  { %v7236_v37 = vadd.f32 %v7228_v29, %v284_v35  ;;  %v7239_v38 = vadd.f32 %v7228_v29, %v359_v36 }
  0xd6   :  { %v5947_v39 = vpop.f32.mrf.mxu0  ;;  %v5958_v40 = vpop.f32.mrf.mxu1 }
  0xde   :  { %v434_v41 = vpop.f32.mrf.mxu0  ;;  %v509_v42 = vpop.f32.mrf.mxu1 }
  0xdf   :  { %v7242_v43 = vadd.f32 %v7228_v29, %v434_v41  ;;  %v7245_v44 = vadd.f32 %v7228_v29, %v509_v42 }
  0xe0   :  { %v5969_v45 = vpop.f32.mrf.mxu0  ;;  %v5980_v46 = vpop.f32.mrf.mxu1 }
  0xe8   :  { %v584_v47 = vpop.f32.mrf.mxu0  ;;  %v659_v48 = vpop.f32.mrf.mxu1 }
  0xe9   :  { %v7248_v49 = vadd.f32 %v7228_v29, %v584_v47  ;;  %v7251_v50 = vadd.f32 %v7228_v29, %v659_v48 }
  0xea   :  { %v5991_v51 = vpop.f32.mrf.mxu0  ;;  %v6002_v52 = vpop.f32.mrf.mxu1 }
  0xeb   :  { %v5558_v51 = vld [vmem:[%s7601_s3 + $0x3] ss:$0 sm:$0xff] }
  0xf2   :  { %v7258_v54 = vpop.f32.mrf.mxu0  ;;  %v805_v55 = vpop.f32.mrf.mxu1 }
  0xf3   :  { %v7261_v56 = vadd.f32 %v7256_v53, %v805_v55 }
  0xf4   :  { %v6013_v57 = vpop.f32.mrf.mxu0  ;;  %v6024_v58 = vpop.f32.mrf.mxu1 }
  0xfc   :  { %v875_v59 = vpop.f32.mrf.mxu0  ;;  %v945_v60 = vpop.f32.mrf.mxu1 }
  0xfd   :  { %v7264_v61 = vadd.f32 %v7256_v53, %v875_v59  ;;  %v7267_v62 = vadd.f32 %v7256_v53, %v945_v60 }
  0xfe   :  { %v6035_v63 = vpop.f32.mrf.mxu0  ;;  %v6046_v0 = vpop.f32.mrf.mxu1 }
 0x106   :  { %v1015_v2 = vpop.f32.mrf.mxu0  ;;  %v1085_v3 = vpop.f32.mrf.mxu1 }
 0x107   :  { %v7270_v4 = vadd.f32 %v7256_v53, %v1015_v2  ;;  %v7273_v5 = vadd.f32 %v7256_v53, %v1085_v3 }
 0x108   :  { %v6057_v6 = vpop.f32.mrf.mxu0  ;;  %v6068_v7 = vpop.f32.mrf.mxu1 }
 0x110   :  { %v1155_v8 = vpop.f32.mrf.mxu0  ;;  %v1225_v9 = vpop.f32.mrf.mxu1 }
 0x111   :  { %v7276_v10 = vadd.f32 %v7256_v53, %v1155_v8  ;;  %v7279_v11 = vadd.f32 %v7256_v53, %v1225_v9 }
 0x112   :  { %v6079_v12 = vpop.f32.mrf.mxu0  ;;  %v6090_v13 = vpop.f32.mrf.mxu1 }
 0x11a   :  { %v7286_v15 = vpop.f32.mrf.mxu0  ;;  %v1371_v16 = vpop.f32.mrf.mxu1 }
 0x11b   :  { %v7289_v17 = vadd.f32 %v7284_v14, %v1371_v16 }
 0x11c   :  { %v6101_v18 = vpop.f32.mrf.mxu0  ;;  %v6112_v19 = vpop.f32.mrf.mxu1 }
 0x124   :  { %v1441_v20 = vpop.f32.mrf.mxu0  ;;  %v1511_v21 = vpop.f32.mrf.mxu1 }
 0x125   :  { %v7292_v22 = vadd.f32 %v7284_v14, %v1441_v20  ;;  %v7295_v23 = vadd.f32 %v7284_v14, %v1511_v21 }
 0x126   :  { %v6123_v24 = vpop.f32.mrf.mxu0  ;;  %v6134_v31 = vpop.f32.mrf.mxu1 }
 0x12e   :  { %v1581_v33 = vpop.f32.mrf.mxu0  ;;  %v1651_v34 = vpop.f32.mrf.mxu1 }
 0x12f   :  { %v7298_v35 = vadd.f32 %v7284_v14, %v1581_v33  ;;  %v7301_v36 = vadd.f32 %v7284_v14, %v1651_v34  ;;  %v135_v33 = vadd.f32 %v7228_v29, %v7230_v30  ;;  %v736_v34 = vadd.f32 %v7256_v53, %v7258_v54 }
 0x130   :  { %v6145_v39 = vpop.f32.mrf.mxu0  ;;  %v6156_v40 = vpop.f32.mrf.mxu1  ;;  %v1302_v29 = vadd.f32 %v7284_v14, %v7286_v15 }
 0x138   :  { %v1721_v41 = vpop.f32.mrf.mxu0  ;;  %v1791_v42 = vpop.f32.mrf.mxu1 }
 0x139   :  { %v7304_v45 = vadd.f32 %v7284_v14, %v1721_v41  ;;  %v7307_v46 = vadd.f32 %v7284_v14, %v1791_v42 }
 0x13a   :  { %v6167_v47 = vpop.f32.mrf.mxu0  ;;  %v6178_v48 = vpop.f32.mrf.mxu1 }
 0x142   :  { %v1867_v52 = vpop.f32.mrf.mxu0  ;;  %v1937_v55 = vpop.f32.mrf.mxu1 }
 0x143   :  { %v7312_v57 = vadd.f32 %v5558_v51, %v1937_v55 }
 0x144   :  { %v6189_v58 = vpop.f32.mrf.mxu0  ;;  %v6200_v59 = vpop.f32.mrf.mxu1 }
 0x14c   :  { %v2007_v60 = vpop.f32.mrf.mxu0  ;;  %v2077_v63 = vpop.f32.mrf.mxu1 }
 0x14d   :  { %v7314_v0 = vadd.f32 %v5558_v51, %v2007_v60  ;;  %v7316_v2 = vadd.f32 %v5558_v51, %v2077_v63 }
 0x14e   :  { %v6211_v3 = vpop.f32.mrf.mxu0  ;;  %v6222_v6 = vpop.f32.mrf.mxu1 }
 0x14f   :  { %v1868_v6 = vadd.f32 %v5558_v51, %v1867_v52 }
 0x156   :  { %v2147_v7 = vpop.f32.mrf.mxu0  ;;  %v2217_v8 = vpop.f32.mrf.mxu1 }
 0x157   :  { %v7318_v9 = vadd.f32 %v5558_v51, %v2147_v7  ;;  %v7320_v12 = vadd.f32 %v5558_v51, %v2217_v8 }
 0x158   :  { %v6233_v13 = vpop.f32.mrf.mxu0  ;;  %v6244_v16 = vpop.f32.mrf.mxu1 }
 0x160   :  { %v2287_v18 = vpop.f32.mrf.mxu0  ;;  %v2357_v19 = vpop.f32.mrf.mxu1 }
 0x161   :  { %v7322_v20 = vadd.f32 %v5558_v51, %v2287_v18  ;;  %v7324_v21 = vadd.f32 %v5558_v51, %v2357_v19 }
 0x162   :  { %v6255_v24 = vpop.f32.mrf.mxu0  ;;  %v6266_v31 = vpop.f32.mrf.mxu1 }
 0x164   :  { %v2435_v39 = vpop.f32.mrf.mxu0  ;;  %v2515_v40 = vpop.f32.mrf.mxu1 }
 0x165   :  { %v2439_v41 = vadd.f32 %v2435_v39, %v135_v33  ;;  %v2519_v42 = vadd.f32 %v2515_v40, %v736_v34  ;;  %v2686_v40 = vld [vmem:[%s7602_s4] sm:$0xf] }
 0x166   :  { %v6271_v47 = vpop.f32.mrf.mxu0  ;;  %v6276_v48 = vpop.f32.mrf.mxu1 }
 0x167   :  { %v5568_v55 = vmul.f32 -1.442695, %v2439_v41  ;;  %v5570_v58 = vmul.f32 -1.442695, %v2519_v42  ;;  %v5585_v41 = vld [vmem:[%s7602_s4 + $0x4] sm:$0xf] }
 0x168   :  { %v2595_v59 = vpop.f32.mrf.mxu0  ;;  %v2670_v60 = vpop.f32.mrf.mxu1 }
 0x169   :  { %6470 = vpow2.f32 %v5568_v55  ;;  %v2674_v7 = vadd.f32 %v2670_v60, %v1868_v6  ;;  %v2599_v53 = vadd.f32 %v2595_v59, %v1302_v29 }
 0x16a   :  { %6472 = vpow2.f32 %v5570_v58  ;;  %v6281_v63 = vpop.f32.mrf.mxu0  ;;  %v6286_v3 = vpop.f32.mrf.mxu1 }
 0x16b   :  { %v5573_v30 = vmul.f32 -1.442695, %v2674_v7 }
 0x16d   :  { %6474 = vpow2.f32 %v5573_v30 }
 0x16e   :  { %6476 = vtanh.f32 %v2599_v53 }
 0x176   :  { %v6471_v54 = vpop.eup %6470 }
 0x177   :  { %v6473_v8 = vpop.eup %6472  ;;  %v2443_v13 = vadd.f32 1.0, %v6471_v54 }
 0x178   :  { %v2523_v16 = vadd.f32 1.0, %v6473_v8 }
 0x179   :  { %6478 = vrcp.f32 %v2443_v13 }
 0x17a   :  { %6480 = vrcp.f32 %v2523_v16  ;;  %v6475_v18 = vpop.eup %6474 }
 0x17b   :  { %v6477_v19 = vpop.eup %6476  ;;  %v2678_v51 = vadd.f32 1.0, %v6475_v18 }
 0x17d   :  { %6482 = vrcp.f32 %v2678_v51 }
 0x186   :  { %v6479_v24 = vpop.eup %6478 }
 0x187   :  { %v6481_v31 = vpop.eup %6480  ;;  %v2682_v33 = vmul.f32 %v6479_v24, %v6477_v19 }
 0x188   :  { %v2681_v52 = vmul.f32 0.0, %v6481_v31 }
 0x18a   :  { %v2683_v34 = vadd.f32 %v2682_v33, %v2681_v52  ;;  %v6483_v14 = vpop.eup %6482 }
 0x18c   :  { %6484 = vtanh.f32 %v2683_v34 }
 0x199   :  { %v6485_v15 = vpop.eup %6484 }
 0x19a   :  { %v2685_v39 = vmul.f32 %v6485_v15, %v6483_v14 }
 0x19c   :  { %6290 = vmatmul.mubr.msk.f32.vlgmr.msra.gmra.mxu0 %vm2361_vm3, %v2685_v39  ;;  %6295 = vmatmul.mubr.msk.f32.vlgmr.msra.gmra.mxu1 %vm2361_vm3, %v2685_v39 }
 0x19d   :  { %6298 = vmatpush3.msk.msra.mxu0 %vm2365_vm2, %v7192_v27  ;;  %6299 = vmatprep.mubr.msk.f32.mxu0 %vm6628_vm1, %v6627_v1 }
 0x19e   :  { %6303 = vmatpush3.msk.msra.mxu1 %vm2365_vm2, %v7199_v28  ;;  %6304 = vmatprep.mubr.msk.f32.mxu1 %vm6628_vm1, %v6627_v1 }
 0x19f   :  { %6312 = vmatprep.subr.mxu1 %v6627_v1  ;;  %6307 = vmatprep.subr.mxu0 %v6627_v1 }
 0x1a0   :  { %6300 = vmatmul.mubr.msk.f32.vlgmr.msra.gmra.mxu0 %vm2361_vm3, %v2685_v39  ;;  %6305 = vmatmul.mubr.msk.f32.vlgmr.msra.gmra.mxu1 %vm2361_vm3, %v2685_v39 }
 0x1a1   :  { %6313 = vmatpush3.msk.msra.mxu1 %vm2365_vm2, %v2686_v40  ;;  %6314 = vmatprep.mubr.msk.f32.mxu1 %vm6628_vm1, %v6627_v1 }
 0x1a2   :  { %6322 = vmatprep.subr.mxu1 %v6627_v1  ;;  %6309 = vmatprep.mubr.msk.f32.mxu0 %vm6628_vm1, %v6627_v1 }
 0x1a3   :  { %6308 = vmatpush3.msk.msra.mxu0 %vm2365_vm2, %v5585_v41 }
 0x1a4   :  { %6315 = vmatmul.mubr.msk.f32.vlgmr.msra.gmra.mxu1 %vm2361_vm3, %v2685_v39  ;;  %6317 = vmatprep.subr.mxu0 %v6627_v1 }
 0x1a5   :  { %6323 = vmatpush3.msk.msra.mxu1 %vm2365_vm2, %v7173_v26  ;;  %6324 = vmatprep.mubr.msk.f32.mxu1 %vm6628_vm1, %v6627_v1 }
 0x1a6   :  { %6332 = vmatprep.subr.mxu1 %v6627_v1 }
 0x25c   :  { %v2756_v42 = vpop.f32.mrf.mxu0  ;;  %v2833_v47 = vpop.f32.mrf.mxu1 }
 0x25d   :  { %v2760_v48 = vadd.f32 %v2756_v42, %v7233_v32  ;;  %v2837_v55 = vadd.f32 %v2833_v47, %v7261_v56 }
 0x25e   :  { %v6291_v58 = vpop.f32.mrf.mxu0  ;;  %v6296_v59 = vpop.f32.mrf.mxu1 }
 0x25f   :  { %v5576_v60 = vmul.f32 -1.442695, %v2760_v48  ;;  %v5579_v63 = vmul.f32 -1.442695, %v2837_v55 }
 0x260   :  { %v2910_v3 = vpop.f32.mrf.mxu0  ;;  %v2982_v6 = vpop.f32.mrf.mxu1 }
 0x261   :  { %6486 = vpow2.f32 %v5576_v60  ;;  %v2986_v54 = vadd.f32 %v2982_v6, %v7312_v57  ;;  %v2914_v32 = vadd.f32 %v2910_v3, %v7289_v17 }
 0x262   :  { %6488 = vpow2.f32 %v5579_v63  ;;  %v6301_v7 = vpop.f32.mrf.mxu0  ;;  %v6306_v29 = vpop.f32.mrf.mxu1 }
 0x263   :  { %v5584_v8 = vmul.f32 -1.442695, %v2986_v54 }
 0x264   :  { %v7368_v30 = vpop.f32.mrf.mxu1 }
 0x265   :  { %6490 = vpow2.f32 %v5584_v8 }
 0x266   :  { %v6316_v53 = vpop.f32.mrf.mxu1  ;;  %6492 = vtanh.f32 %v2914_v32 }
 0x26e   :  { %v6487_v13 = vpop.eup %6486 }
 0x26f   :  { %v6489_v56 = vpop.eup %6488  ;;  %v2764_v16 = vadd.f32 1.0, %v6487_v13 }
 0x270   :  { %v2841_v18 = vadd.f32 1.0, %v6489_v56 }
 0x271   :  { %6494 = vrcp.f32 %v2764_v16 }
 0x272   :  { %6496 = vrcp.f32 %v2841_v18  ;;  %v6491_v19 = vpop.eup %6490 }
 0x273   :  { %v6493_v24 = vpop.eup %6492  ;;  %v2990_v52 = vadd.f32 1.0, %v6491_v19 }
 0x275   :  { %6498 = vrcp.f32 %v2990_v52 }
 0x27e   :  { %v6495_v31 = vpop.eup %6494 }
 0x27f   :  { %v6497_v33 = vpop.eup %6496  ;;  %v2994_v51 = vmul.f32 %v6495_v31, %v6493_v24 }
 0x280   :  { %v2993_v14 = vmul.f32 %v6497_v33, %v2683_v34  ;;  %v5601_v34 = vld [vmem:[%s7602_s4 + $0x8] sm:$0xf] }
 0x282   :  { %v2995_v15 = vadd.f32 %v2994_v51, %v2993_v14  ;;  %v6499_v57 = vpop.eup %6498 }
 0x284   :  { %6500 = vtanh.f32 %v2995_v15 }
 0x291   :  { %v6501_v17 = vpop.eup %6500 }
 0x292   :  { %v2997_v39 = vmul.f32 %v6501_v17, %v6499_v57 }
 0x294   :  { %6310 = vmatmul.mubr.msk.f32.vlgmr.msra.gmra.mxu0 %vm2361_vm3, %v2997_v39  ;;  %6325 = vmatmul.mubr.msk.f32.vlgmr.msra.gmra.mxu1 %vm2361_vm3, %v2997_v39 }
 0x295   :  { %6318 = vmatpush3.msk.msra.mxu0 %vm2365_vm2, %v7168_v25  ;;  %6319 = vmatprep.mubr.msk.f32.mxu0 %vm6628_vm1, %v6627_v1 }
 0x296   :  { %6333 = vmatpush3.msk.msra.mxu1 %vm2365_vm2, %v7199_v28  ;;  %6334 = vmatprep.mubr.msk.f32.mxu1 %vm6628_vm1, %v6627_v1 }
 0x297   :  { %6327 = vmatprep.subr.mxu0 %v6627_v1  ;;  %6342 = vmatprep.subr.mxu1 %v6627_v1 }
 0x298   :  { %6320 = vmatmul.mubr.msk.f32.vlgmr.msra.gmra.mxu0 %vm2361_vm3, %v2997_v39  ;;  %6335 = vmatmul.mubr.msk.f32.vlgmr.msra.gmra.mxu1 %vm2361_vm3, %v2997_v39 }
 0x299   :  { %6328 = vmatpush3.msk.msra.mxu0 %vm2365_vm2, %v7192_v27  ;;  %6329 = vmatprep.mubr.msk.f32.mxu0 %vm6628_vm1, %v6627_v1 }
 0x29a   :  { %6337 = vmatprep.subr.mxu0 %v6627_v1  ;;  %6343 = vmatpush3.msk.msra.mxu1 %vm2365_vm2, %v7168_v25 }
 0x29b   :  { %6344 = vmatprep.mubr.msk.f32.mxu1 %vm6628_vm1, %v6627_v1  ;;  %6352 = vmatprep.subr.mxu1 %v6627_v1 }
 0x29c   :  { %6330 = vmatmul.mubr.msk.f32.vlgmr.msra.gmra.mxu0 %vm2361_vm3, %v2997_v39 }
 0x29d   :  { %6339 = vmatprep.mubr.msk.f32.mxu0 %vm6628_vm1, %v6627_v1  ;;  %6338 = vmatpush3.msk.msra.mxu0 %vm2365_vm2, %v5601_v34 }
 0x29e   :  { %6347 = vmatprep.subr.mxu0 %v6627_v1 }
 0x354   :  { %v3072_v40 = vpop.f32.mrf.mxu0  ;;  %v3292_v41 = vpop.f32.mrf.mxu1 }
 0x355   :  { %v3296_v42 = vadd.f32 %v3292_v41, %v7264_v61 }
 0x356   :  { %v6311_v47 = vpop.f32.mrf.mxu0  ;;  %v6326_v48 = vpop.f32.mrf.mxu1 }
 0x357   :  { %v5595_v55 = vmul.f32 -1.442695, %v3296_v42 }
 0x358   :  { %v3215_v58 = vpop.f32.mrf.mxu0  ;;  %v3441_v59 = vpop.f32.mrf.mxu1 }
 0x359   :  { %6502 = vpow2.f32 %v5595_v55  ;;  %v3219_v60 = vadd.f32 %v3215_v58, %v7236_v37  ;;  %v3445_v53 = vadd.f32 %v3441_v59, %v7314_v0 }
 0x35a   :  { %v6321_v63 = vpop.f32.mrf.mxu0  ;;  %v6336_v3 = vpop.f32.mrf.mxu1 }
 0x35b   :  { %v5592_v6 = vmul.f32 -1.442695, %v3219_v60  ;;  %v5600_v8 = vmul.f32 -1.442695, %v3445_v53 }
 0x35c   :  { %v3369_v7 = vpop.f32.mrf.mxu0 }
 0x35d   :  { %6504 = vpow2.f32 %v5592_v6  ;;  %v3373_v61 = vadd.f32 %v3369_v7, %v7292_v22  ;;  %v5615_v22 = vld [vmem:[%s7602_s4 + $0xc] sm:$0xf] }
 0x35e   :  { %v6331_v29 = vpop.f32.mrf.mxu0  ;;  %6506 = vpow2.f32 %v5600_v8 }
 0x366   :  { %v6503_v54 = vpop.eup %6502 }
 0x367   :  { %v3300_v32 = vadd.f32 1.0, %v6503_v54 }
 0x369   :  { %6508 = vrcp.f32 %v3300_v32 }
 0x36a   :  { %v6505_v13 = vpop.eup %6504  ;;  %6510 = vtanh.f32 %v3373_v61 }
 0x36b   :  { %v3223_v56 = vadd.f32 1.0, %v6505_v13  ;;  %v6507_v37 = vpop.eup %6506 }
 0x36c   :  { %v3449_v24 = vadd.f32 1.0, %v6507_v37 }
 0x36d   :  { %6512 = vrcp.f32 %v3223_v56 }
 0x36e   :  { %6514 = vrcp.f32 %v3449_v24 }
 0x376   :  { %v6509_v16 = vpop.eup %6508 }
 0x377   :  { %v6511_v18 = vpop.eup %6510  ;;  %v3452_v31 = vmul.f32 %v6509_v16, %v2995_v15  ;;  %v3146_v15 = vadd.f32 %v7368_v30, %v3072_v40 }
 0x37a   :  { %v6513_v19 = vpop.eup %6512 }
 0x37b   :  { %v3453_v33 = vmul.f32 %v6513_v19, %v6511_v18  ;;  %v6515_v0 = vpop.eup %6514  ;;  %v5629_v19 = vld [vmem:[%s7602_s4 + $0x10] sm:$0xf] }
 0x37d   :  { %v3454_v51 = vadd.f32 %v3453_v33, %v3452_v31 }
 0x37f   :  { %6516 = vtanh.f32 %v3454_v51 }
 0x38c   :  { %v6517_v52 = vpop.eup %6516 }
 0x38d   :  { %v3456_v14 = vmul.f32 %v6517_v52, %v6515_v0 }
 0x38f   :  { %6340 = vmatmul.mubr.msk.f32.vlgmr.msra.gmra.mxu0 %vm2361_vm3, %v3456_v14  ;;  %6345 = vmatmul.mubr.msk.f32.vlgmr.msra.gmra.mxu1 %vm2361_vm3, %v3456_v14 }
 0x390   :  { %6348 = vmatpush3.msk.msra.mxu0 %vm2365_vm2, %v7173_v26  ;;  %6349 = vmatprep.mubr.msk.f32.mxu0 %vm6628_vm1, %v6627_v1 }
 0x391   :  { %6353 = vmatpush3.msk.msra.mxu1 %vm2365_vm2, %v7192_v27  ;;  %6354 = vmatprep.mubr.msk.f32.mxu1 %vm6628_vm1, %v6627_v1 }
 0x392   :  { %6357 = vmatprep.subr.mxu0 %v6627_v1  ;;  %6362 = vmatprep.subr.mxu1 %v6627_v1 }
 0x393   :  { %6350 = vmatmul.mubr.msk.f32.vlgmr.msra.gmra.mxu0 %vm2361_vm3, %v3456_v14  ;;  %6355 = vmatmul.mubr.msk.f32.vlgmr.msra.gmra.mxu1 %vm2361_vm3, %v3456_v14 }
 0x394   :  { %6358 = vmatpush3.msk.msra.mxu0 %vm2365_vm2, %v7199_v28  ;;  %6359 = vmatprep.mubr.msk.f32.mxu0 %vm6628_vm1, %v6627_v1 }
 0x395   :  { %6367 = vmatprep.subr.mxu0 %v6627_v1  ;;  %6364 = vmatprep.mubr.msk.f32.mxu1 %vm6628_vm1, %v6627_v1 }
 0x396   :  { %6363 = vmatpush3.msk.msra.mxu1 %vm2365_vm2, %v5615_v22 }
 0x397   :  { %6360 = vmatmul.mubr.msk.f32.vlgmr.msra.gmra.mxu0 %vm2361_vm3, %v3456_v14  ;;  %6372 = vmatprep.subr.mxu1 %v6627_v1 }
 0x398   :  { %6368 = vmatpush3.msk.msra.mxu0 %vm2365_vm2, %v7168_v25  ;;  %6369 = vmatprep.mubr.msk.f32.mxu0 %vm6628_vm1, %v6627_v1 }
 0x399   :  { %6377 = vmatprep.subr.mxu0 %v6627_v1 }
 0x44f   :  { %v3531_v57 = vpop.f32.mrf.mxu0  ;;  %v3602_v17 = vpop.f32.mrf.mxu1 }
 0x450   :  { %v3535_v39 = vadd.f32 %v3531_v57, %v3146_v15  ;;  %v3606_v34 = vadd.f32 %v3602_v17, %v7239_v38 }
 0x451   :  { %v6341_v41 = vpop.f32.mrf.mxu0  ;;  %v6346_v42 = vpop.f32.mrf.mxu1 }
 0x452   :  { %v5606_v47 = vmul.f32 -1.442695, %v3606_v34 }
 0x453   :  { %v3679_v48 = vpop.f32.mrf.mxu0  ;;  %v3756_v55 = vpop.f32.mrf.mxu1 }
 0x454   :  { %6518 = vpow2.f32 %v5606_v47  ;;  %v3683_v58 = vadd.f32 %v3679_v48, %v7267_v62  ;;  %v3760_v40 = vadd.f32 %v3756_v55, %v7295_v23 }
 0x455   :  { %v6351_v59 = vpop.f32.mrf.mxu0  ;;  %v6356_v60 = vpop.f32.mrf.mxu1 }
 0x456   :  { %v5609_v63 = vmul.f32 -1.442695, %v3683_v58 }
 0x457   :  { %v3828_v3 = vpop.f32.mrf.mxu0 }
 0x458   :  { %6520 = vpow2.f32 %v5609_v63  ;;  %v3832_v30 = vadd.f32 %v3828_v3, %v7316_v2 }
 0x459   :  { %v6361_v6 = vpop.f32.mrf.mxu0  ;;  %6522 = vtanh.f32 %v3760_v40 }
 0x45a   :  { %v5614_v38 = vmul.f32 -1.442695, %v3832_v30 }
 0x461   :  { %v6519_v7 = vpop.eup %6518 }
 0x462   :  { %v3610_v29 = vadd.f32 1.0, %v6519_v7 }
 0x464   :  { %6524 = vrcp.f32 %v3610_v29 }
 0x465   :  { %v6521_v53 = vpop.eup %6520  ;;  %6526 = vpow2.f32 %v5614_v38 }
 0x466   :  { %v3687_v54 = vadd.f32 1.0, %v6521_v53  ;;  %v6523_v62 = vpop.eup %6522  ;;  %v5643_v53 = vld [vmem:[%s7602_s4 + $0x14] sm:$0xf] }
 0x468   :  { %6528 = vrcp.f32 %v3687_v54 }
 0x471   :  { %v6525_v8 = vpop.eup %6524 }
 0x472   :  { %v6527_v32 = vpop.eup %6526  ;;  %v3840_v61 = vmul.f32 %v6525_v8, %v6523_v62 }
 0x473   :  { %v3836_v56 = vadd.f32 1.0, %v6527_v32 }
 0x475   :  { %v6529_v13 = vpop.eup %6528  ;;  %6530 = vrcp.f32 %v3836_v56 }
 0x476   :  { %v3839_v37 = vmul.f32 %v6529_v13, %v3454_v51 }
 0x478   :  { %v3841_v16 = vadd.f32 %v3840_v61, %v3839_v37 }
 0x47a   :  { %6532 = vtanh.f32 %v3841_v16 }
 0x482   :  { %v6531_v23 = vpop.eup %6530 }
 0x487   :  { %v6533_v2 = vpop.eup %6532 }
 0x488   :  { %v3843_v18 = vmul.f32 %v6533_v2, %v6531_v23 }
 0x48a   :  { %6365 = vmatmul.mubr.msk.f32.vlgmr.msra.gmra.mxu1 %vm2361_vm3, %v3843_v18  ;;  %6370 = vmatmul.mubr.msk.f32.vlgmr.msra.gmra.mxu0 %vm2361_vm3, %v3843_v18 }
 0x48b   :  { %6373 = vmatpush3.msk.msra.mxu1 %vm2365_vm2, %v7173_v26  ;;  %6374 = vmatprep.mubr.msk.f32.mxu1 %vm6628_vm1, %v6627_v1 }
 0x48c   :  { %6378 = vmatpush3.msk.msra.mxu0 %vm2365_vm2, %v7192_v27  ;;  %6379 = vmatprep.mubr.msk.f32.mxu0 %vm6628_vm1, %v6627_v1 }
 0x48d   :  { %6382 = vmatprep.subr.mxu1 %v6627_v1  ;;  %6387 = vmatprep.subr.mxu0 %v6627_v1 }
 0x48e   :  { %6375 = vmatmul.mubr.msk.f32.vlgmr.msra.gmra.mxu1 %vm2361_vm3, %v3843_v18  ;;  %6380 = vmatmul.mubr.msk.f32.vlgmr.msra.gmra.mxu0 %vm2361_vm3, %v3843_v18 }
 0x48f   :  { %6383 = vmatpush3.msk.msra.mxu1 %vm2365_vm2, %v7199_v28  ;;  %6384 = vmatprep.mubr.msk.f32.mxu1 %vm6628_vm1, %v6627_v1 }
 0x490   :  { %6392 = vmatprep.subr.mxu1 %v6627_v1  ;;  %6389 = vmatprep.mubr.msk.f32.mxu0 %vm6628_vm1, %v6627_v1 }
 0x491   :  { %6388 = vmatpush3.msk.msra.mxu0 %vm2365_vm2, %v5629_v19 }
 0x492   :  { %6385 = vmatmul.mubr.msk.f32.vlgmr.msra.gmra.mxu1 %vm2361_vm3, %v3843_v18  ;;  %6397 = vmatprep.subr.mxu0 %v6627_v1 }
 0x493   :  { %6393 = vmatpush3.msk.msra.mxu1 %vm2365_vm2, %v7168_v25  ;;  %6394 = vmatprep.mubr.msk.f32.mxu1 %vm6628_vm1, %v6627_v1 }
 0x494   :  { %6402 = vmatprep.subr.mxu1 %v6627_v1 }
 0x54a   :  { %v3918_v24 = vpop.f32.mrf.mxu1  ;;  %v3989_v31 = vpop.f32.mrf.mxu0 }
 0x54b   :  { %v3922_v33 = vadd.f32 %v3918_v24, %v3535_v39  ;;  %v3993_v51 = vadd.f32 %v3989_v31, %v7242_v43 }
 0x54c   :  { %v6366_v0 = vpop.f32.mrf.mxu1  ;;  %v6371_v52 = vpop.f32.mrf.mxu0 }
 0x54d   :  { %v5620_v14 = vmul.f32 -1.442695, %v3993_v51 }
 0x54e   :  { %v4066_v22 = vpop.f32.mrf.mxu1  ;;  %v4143_v15 = vpop.f32.mrf.mxu0 }
 0x54f   :  { %6534 = vpow2.f32 %v5620_v14  ;;  %v4070_v57 = vadd.f32 %v4066_v22, %v7270_v4  ;;  %v4147_v39 = vadd.f32 %v4143_v15, %v7298_v35 }
 0x550   :  { %v6376_v17 = vpop.f32.mrf.mxu1  ;;  %v6381_v34 = vpop.f32.mrf.mxu0 }
 0x551   :  { %v5623_v41 = vmul.f32 -1.442695, %v4070_v57 }
 0x552   :  { %v4215_v42 = vpop.f32.mrf.mxu1 }
 0x553   :  { %6536 = vpow2.f32 %v5623_v41  ;;  %v4219_v48 = vadd.f32 %v4215_v42, %v7318_v9 }
 0x554   :  { %v6386_v47 = vpop.f32.mrf.mxu1  ;;  %6538 = vtanh.f32 %v4147_v39 }
 0x555   :  { %v5628_v43 = vmul.f32 -1.442695, %v4219_v48 }
 0x55c   :  { %v6535_v55 = vpop.eup %6534 }
 0x55d   :  { %v3997_v58 = vadd.f32 1.0, %v6535_v55 }
 0x55f   :  { %6540 = vrcp.f32 %v3997_v58 }
 0x560   :  { %v6537_v59 = vpop.eup %6536  ;;  %6542 = vpow2.f32 %v5628_v43 }
 0x561   :  { %v4074_v60 = vadd.f32 1.0, %v6537_v59  ;;  %v6539_v4 = vpop.eup %6538 }
 0x563   :  { %6544 = vrcp.f32 %v4074_v60 }
 0x56c   :  { %v6541_v63 = vpop.eup %6540 }
 0x56d   :  { %v6543_v3 = vpop.eup %6542  ;;  %v4227_v6 = vmul.f32 %v6541_v63, %v6539_v4 }
 0x56e   :  { %v4223_v40 = vadd.f32 1.0, %v6543_v3 }
 0x570   :  { %v6545_v30 = vpop.eup %6544  ;;  %6546 = vrcp.f32 %v4223_v40 }
 0x571   :  { %v4226_v7 = vmul.f32 %v6545_v30, %v3841_v16 }
 0x573   :  { %v4228_v38 = vadd.f32 %v4227_v6, %v4226_v7 }
 0x575   :  { %6548 = vtanh.f32 %v4228_v38 }
 0x57d   :  { %v6547_v35 = vpop.eup %6546 }
 0x582   :  { %v6549_v9 = vpop.eup %6548 }
 0x583   :  { %v4230_v29 = vmul.f32 %v6549_v9, %v6547_v35 }
 0x585   :  { %6390 = vmatmul.mubr.msk.f32.vlgmr.msra.gmra.mxu0 %vm2361_vm3, %v4230_v29  ;;  %6395 = vmatmul.mubr.msk.f32.vlgmr.msra.gmra.mxu1 %vm2361_vm3, %v4230_v29 }
 0x586   :  { %6398 = vmatpush3.msk.msra.mxu0 %vm2365_vm2, %v7173_v26  ;;  %6399 = vmatprep.mubr.msk.f32.mxu0 %vm6628_vm1, %v6627_v1 }
 0x587   :  { %6403 = vmatpush3.msk.msra.mxu1 %vm2365_vm2, %v7192_v27  ;;  %6404 = vmatprep.mubr.msk.f32.mxu1 %vm6628_vm1, %v6627_v1 }
 0x588   :  { %6407 = vmatprep.subr.mxu0 %v6627_v1  ;;  %6412 = vmatprep.subr.mxu1 %v6627_v1 }
 0x589   :  { %6400 = vmatmul.mubr.msk.f32.vlgmr.msra.gmra.mxu0 %vm2361_vm3, %v4230_v29  ;;  %6405 = vmatmul.mubr.msk.f32.vlgmr.msra.gmra.mxu1 %vm2361_vm3, %v4230_v29 }
 0x58a   :  { %6408 = vmatpush3.msk.msra.mxu0 %vm2365_vm2, %v7199_v28  ;;  %6409 = vmatprep.mubr.msk.f32.mxu0 %vm6628_vm1, %v6627_v1 }
 0x58b   :  { %6417 = vmatprep.subr.mxu0 %v6627_v1  ;;  %6414 = vmatprep.mubr.msk.f32.mxu1 %vm6628_vm1, %v6627_v1 }
 0x58c   :  { %6413 = vmatpush3.msk.msra.mxu1 %vm2365_vm2, %v5643_v53 }
 0x58d   :  { %6410 = vmatmul.mubr.msk.f32.vlgmr.msra.gmra.mxu0 %vm2361_vm3, %v4230_v29  ;;  %6422 = vmatprep.subr.mxu1 %v6627_v1 }
 0x58e   :  { %6418 = vmatpush3.msk.msra.mxu0 %vm2365_vm2, %v7168_v25  ;;  %6419 = vmatprep.mubr.msk.f32.mxu0 %vm6628_vm1, %v6627_v1 }
 0x58f   :  { %6427 = vmatprep.subr.mxu0 %v6627_v1 }
 0x645   :  { %v4305_v54 = vpop.f32.mrf.mxu0  ;;  %v4376_v62 = vpop.f32.mrf.mxu1 }
 0x646   :  { %v4309_v8 = vadd.f32 %v4305_v54, %v3922_v33  ;;  %v4380_v32 = vadd.f32 %v4376_v62, %v7245_v44 }
 0x647   :  { %v6391_v61 = vpop.f32.mrf.mxu0  ;;  %v6396_v13 = vpop.f32.mrf.mxu1 }
 0x648   :  { %v5634_v56 = vmul.f32 -1.442695, %v4380_v32 }
 0x649   :  { %v4453_v37 = vpop.f32.mrf.mxu0  ;;  %v4530_v16 = vpop.f32.mrf.mxu1 }
 0x64a   :  { %6550 = vpow2.f32 %v5634_v56  ;;  %v4457_v23 = vadd.f32 %v4453_v37, %v7273_v5  ;;  %v4534_v33 = vadd.f32 %v4530_v16, %v7301_v36  ;;  %v6602_v16 = vld [vmem:[%s7600_s2 + $0x4] sm:$0xf] }
 0x64b   :  { %v6401_v2 = vpop.f32.mrf.mxu0  ;;  %v6406_v18 = vpop.f32.mrf.mxu1 }
 0x64c   :  { %v5637_v19 = vmul.f32 -1.442695, %v4457_v23  ;;  %v6603_v23 = vld [vmem:[%s7600_s2 + $0x8] sm:$0xf]  ;;  %v6604_v2 = vld [vmem:[%s7600_s2 + $0xc] sm:$0xf] }
 0x64d   :  { %v4602_v24 = vpop.f32.mrf.mxu0  ;;  %v5671_v18 = vld [vmem:[%s7602_s4 + $0x1c] sm:$0xf] }
 0x64e   :  { %6552 = vpow2.f32 %v5637_v19  ;;  %v4606_v51 = vadd.f32 %v4602_v24, %v7320_v12 }
 0x64f   :  { %v6411_v31 = vpop.f32.mrf.mxu0  ;;  %6554 = vtanh.f32 %v4534_v33 }
 0x650   :  { %v5642_v44 = vmul.f32 -1.442695, %v4606_v51 }
 0x657   :  { %v6551_v0 = vpop.eup %6550 }
 0x658   :  { %v4384_v52 = vadd.f32 1.0, %v6551_v0 }
 0x65a   :  { %6556 = vrcp.f32 %v4384_v52 }
 0x65b   :  { %v6553_v14 = vpop.eup %6552  ;;  %6558 = vpow2.f32 %v5642_v44 }
 0x65c   :  { %v4461_v22 = vadd.f32 1.0, %v6553_v14  ;;  %v6555_v5 = vpop.eup %6554 }
 0x65e   :  { %6560 = vrcp.f32 %v4461_v22 }
 0x667   :  { %v6557_v15 = vpop.eup %6556 }
 0x668   :  { %v6559_v57 = vpop.eup %6558  ;;  %v4614_v17 = vmul.f32 %v6557_v15, %v6555_v5 }
 0x669   :  { %v4610_v41 = vadd.f32 1.0, %v6559_v57 }
 0x66b   :  { %v6561_v34 = vpop.eup %6560  ;;  %6562 = vrcp.f32 %v4610_v41 }
 0x66c   :  { %v4613_v42 = vmul.f32 %v6561_v34, %v4228_v38 }
 0x66e   :  { %v4615_v47 = vadd.f32 %v4614_v17, %v4613_v42 }
 0x670   :  { %6564 = vtanh.f32 %v4615_v47 }
 0x678   :  { %v6563_v36 = vpop.eup %6562 }
 0x67d   :  { %v6565_v12 = vpop.eup %6564 }
 0x67e   :  { %v4617_v48 = vmul.f32 %v6565_v12, %v6563_v36 }
 0x680   :  { %6415 = vmatmul.mubr.msk.f32.vlgmr.msra.gmra.mxu1 %vm2361_vm3, %v4617_v48  ;;  %6420 = vmatmul.mubr.msk.f32.vlgmr.msra.gmra.mxu0 %vm2361_vm3, %v4617_v48 }
 0x681   :  { %6423 = vmatpush3.msk.msra.mxu1 %vm2365_vm2, %v7173_v26  ;;  %6424 = vmatprep.mubr.msk.f32.mxu1 %vm6628_vm1, %v6627_v1  ;;  %v5657_v26 = vld [vmem:[%s7602_s4 + $0x18] sm:$0xf] }
 0x682   :  { %6428 = vmatpush3.msk.msra.mxu0 %vm2365_vm2, %v7192_v27  ;;  %6429 = vmatprep.mubr.msk.f32.mxu0 %vm6628_vm1, %v6627_v1 }
 0x683   :  { %6432 = vmatprep.subr.mxu1 %v6627_v1  ;;  %6437 = vmatprep.subr.mxu0 %v6627_v1 }
 0x684   :  { %6425 = vmatmul.mubr.msk.f32.vlgmr.msra.gmra.mxu1 %vm2361_vm3, %v4617_v48  ;;  %6430 = vmatmul.mubr.msk.f32.vlgmr.msra.gmra.mxu0 %vm2361_vm3, %v4617_v48 }
 0x685   :  { %6433 = vmatpush3.msk.msra.mxu1 %vm2365_vm2, %v7199_v28  ;;  %6434 = vmatprep.mubr.msk.f32.mxu1 %vm6628_vm1, %v6627_v1 }
 0x686   :  { %6442 = vmatprep.subr.mxu1 %v6627_v1  ;;  %6439 = vmatprep.mubr.msk.f32.mxu0 %vm6628_vm1, %v6627_v1 }
 0x687   :  { %6438 = vmatpush3.msk.msra.mxu0 %vm2365_vm2, %v5657_v26 }
 0x688   :  { %6435 = vmatmul.mubr.msk.f32.vlgmr.msra.gmra.mxu1 %vm2361_vm3, %v4617_v48  ;;  %6447 = vmatprep.subr.mxu0 %v6627_v1 }
 0x689   :  { %6443 = vmatpush3.msk.msra.mxu1 %vm2365_vm2, %v7168_v25  ;;  %6444 = vmatprep.mubr.msk.f32.mxu1 %vm6628_vm1, %v6627_v1 }
 0x68a   :  { %6452 = vmatprep.subr.mxu1 %v6627_v1 }
 0x740   :  { %v4692_v27 = vpop.f32.mrf.mxu1  ;;  %v4763_v28 = vpop.f32.mrf.mxu0 }
 0x741   :  { %v4696_v39 = vadd.f32 %v4692_v27, %v4309_v8  ;;  %v4767_v55 = vadd.f32 %v4763_v28, %v7248_v49 }
 0x742   :  { %v6416_v43 = vpop.f32.mrf.mxu1  ;;  %v6421_v25 = vpop.f32.mrf.mxu0 }
 0x743   :  { %v5648_v58 = vmul.f32 -1.442695, %v4767_v55 }
 0x744   :  { %v4840_v59 = vpop.f32.mrf.mxu1  ;;  %v4917_v60 = vpop.f32.mrf.mxu0 }
 0x745   :  { %6566 = vpow2.f32 %v5648_v58  ;;  %v4844_v4 = vadd.f32 %v4840_v59, %v7276_v10  ;;  %v4921_v38 = vadd.f32 %v4917_v60, %v7304_v45  ;;  %v5674_v59 = vld [vmem:[%s7603_s5] ss:$0 sm:$0xff]  ;;  %s6605_s5 = scalar_lea.vmem %s5499_s30, 32 }
 0x746   :  { %v6426_v63 = vpop.f32.mrf.mxu1  ;;  %v6431_v3 = vpop.f32.mrf.mxu0  ;;  %p6606_p0 = scmp.ne.s32.totalorder %s5499_s30, %s6605_s5  ;;  %p6611_p2 = scmp.lt.s32.totalorder %s6605_s5, %s6605_s5 }
 0x747   :  { %v5651_v6 = vmul.f32 -1.442695, %v4844_v4 }
 0x748   :  { %v4989_v30 = vpop.f32.mrf.mxu1  ;;  %p6612_p3 = por %p6611_p2, %p6610_p1 }
 0x749   :  { %6568 = vpow2.f32 %v5651_v6  ;;  %v4993_v7 = vadd.f32 %v4989_v30, %v7322_v20 }
 0x74a   :  { %v6436_v40 = vpop.f32.mrf.mxu1  ;;  %6570 = vtanh.f32 %v4921_v38  ;;  %p6613_p4 = pnand %p6612_p3, %p6606_p0 }
 0x74b   :  { %v5656_v49 = vmul.f32 -1.442695, %v4993_v7 }
 0x752   :  { %v6567_v35 = vpop.eup %6566 }
 0x753   :  { %v4771_v9 = vadd.f32 1.0, %v6567_v35 }
 0x755   :  { %6572 = vrcp.f32 %v4771_v9 }
 0x756   :  { %v6569_v29 = vpop.eup %6568  ;;  %6574 = vpow2.f32 %v5656_v49 }
 0x757   :  { %v4848_v53 = vadd.f32 1.0, %v6569_v29  ;;  %v6571_v10 = vpop.eup %6570 }
 0x759   :  { %6576 = vrcp.f32 %v4848_v53 }
 0x762   :  { %v6573_v54 = vpop.eup %6572 }
 0x763   :  { %v6575_v62 = vpop.eup %6574  ;;  %v5001_v8 = vmul.f32 %v6573_v54, %v6571_v10 }
 0x764   :  { %v4997_v61 = vadd.f32 1.0, %v6575_v62 }
 0x766   :  { %v6577_v32 = vpop.eup %6576  ;;  %6578 = vrcp.f32 %v4997_v61 }
 0x767   :  { %v5000_v13 = vmul.f32 %v6577_v32, %v4615_v47 }
 0x769   :  { %v5002_v56 = vadd.f32 %v5001_v8, %v5000_v13 }
 0x76b   :  { %6580 = vtanh.f32 %v5002_v56 }
 0x773   :  { %v6579_v45 = vpop.eup %6578 }
 0x778   :  { %v6581_v20 = vpop.eup %6580 }
 0x779   :  { %v5004_v37 = vmul.f32 %v6581_v20, %v6579_v45 }
 0x77b   :  { %6440 = vmatmul.mubr.msk.f32.vlgmr.msra.gmra.mxu0 %vm2361_vm3, %v5004_v37  ;;  %6445 = vmatmul.mubr.msk.f32.vlgmr.msra.gmra.mxu1 %vm2361_vm3, %v5004_v37 }
 0x77c   :  { %6448 = vmatpush3.msk.msra.mxu0 %vm2365_vm2, %v6602_v16  ;;  %6449 = vmatprep.mubr.msk.f32.mxu0 %vm6628_vm1, %v6627_v1 }
 0x77d   :  { %6453 = vmatpush3.msk.msra.mxu1 %vm2365_vm2, %v6603_v23  ;;  %6454 = vmatprep.mubr.msk.f32.mxu1 %vm6628_vm1, %v6627_v1 }
 0x77e   :  { %6457 = vmatprep.subr.mxu0 %v6627_v1  ;;  %6462 = vmatprep.subr.mxu1 %v6627_v1 }
 0x77f   :  { %6450 = vmatmul.mubr.msk.f32.vlgmr.msra.gmra.mxu0 %vm2361_vm3, %v5004_v37  ;;  %6455 = vmatmul.mubr.msk.f32.vlgmr.msra.gmra.mxu1 %vm2361_vm3, %v5004_v37 }
 0x780   :  { %6458 = vmatpush3.msk.msra.mxu0 %vm2365_vm2, %v6604_v2  ;;  %6459 = vmatprep.mubr.msk.f32.mxu0 %vm6628_vm1, %v6627_v1 }
 0x781   :  { %6464 = vmatprep.mubr.msk.f32.mxu1 %vm6628_vm1, %v6627_v1  ;;  %6463 = vmatpush3.msk.msra.mxu1 %vm2365_vm2, %v5671_v18 }
 0x783   :  { %6460 = vmatmul.mubr.msk.f32.vlgmr.msra.gmra.mxu0 %vm2361_vm3, %v5004_v37 }
 0x83b   :  { %v5079_v19 = vpop.f32.mrf.mxu0  ;;  %v5150_v24 = vpop.f32.mrf.mxu1 }
 0x83c   :  { %v5083_v31 = vadd.f32 %v5079_v19, %v4696_v39  ;;  %v5154_v51 = vadd.f32 %v5150_v24, %v7251_v50 }
 0x83d   :  { %v6441_v33 = vpop.f32.mrf.mxu0  ;;  %v6446_v0 = vpop.f32.mrf.mxu1 }
 0x83e   :  { %v5662_v44 = vmul.f32 -1.442695, %v5154_v51 }
 0x83f   :  { %v5227_v52 = vpop.f32.mrf.mxu0  ;;  %v5304_v14 = vpop.f32.mrf.mxu1 }
 0x840   :  { %6582 = vpow2.f32 %v5662_v44  ;;  %v5231_v1 = vadd.f32 %v5227_v52, %v7279_v11  ;;  %v5308_v41 = vadd.f32 %v5304_v14, %v7307_v46 }
 0x841   :  { %v6451_v22 = vpop.f32.mrf.mxu0  ;;  %v6456_v5 = vpop.f32.mrf.mxu1 }
 0x842   :  { %v5665_v15 = vmul.f32 -1.442695, %v5231_v1 }
 0x843   :  { %v5376_v57 = vpop.f32.mrf.mxu0 }
 0x844   :  { %6584 = vpow2.f32 %v5665_v15  ;;  %v5380_v34 = vadd.f32 %v5376_v57, %v7324_v21 }
 0x845   :  { %v6461_v17 = vpop.f32.mrf.mxu0  ;;  %6586 = vtanh.f32 %v5308_v41 }
 0x846   :  { %v5670_v50 = vmul.f32 -1.442695, %v5380_v34 }
 0x84d   :  { %v6583_v42 = vpop.eup %6582 }
 0x84e   :  { %v5158_v47 = vadd.f32 1.0, %v6583_v42 }
 0x850   :  { %6588 = vrcp.f32 %v5158_v47 }
 0x851   :  { %v6585_v36 = vpop.eup %6584  ;;  %6590 = vpow2.f32 %v5670_v50 }
 0x852   :  { %v5235_v12 = vadd.f32 1.0, %v6585_v36  ;;  %v6587_v11 = vpop.eup %6586 }
 0x854   :  { %6592 = vrcp.f32 %v5235_v12 }
 0x85d   :  { %v6589_v48 = vpop.eup %6588 }
 0x85e   :  { %v6591_v26 = vpop.eup %6590  ;;  %v5388_v27 = vmul.f32 %v6589_v48, %v6587_v11 }
 0x85f   :  { %v5384_v39 = vadd.f32 1.0, %v6591_v26 }
 0x861   :  { %v6593_v28 = vpop.eup %6592  ;;  %6594 = vrcp.f32 %v5384_v39 }
 0x862   :  { %v5387_v55 = vmul.f32 %v6593_v28, %v5002_v56 }
 0x864   :  { %v5389_v43 = vadd.f32 %v5388_v27, %v5387_v55 }
 0x866   :  { %6596 = vtanh.f32 %v5389_v43 }
 0x86e   :  { %v6595_v46 = vpop.eup %6594 }
 0x873   :  { %v6597_v21 = vpop.eup %6596 }
 0x874   :  { %v5391_v25 = vmul.f32 %v6597_v21, %v6595_v46 }
 0x876   :  { %6465 = vmatmul.mubr.msk.f32.vlgmr.msra.gmra.mxu1 %vm2361_vm3, %v5391_v25 }
 0x936   :  { %v5466_v58 = vpop.f32.mrf.mxu1 }
 0x937   :  { %v5470_v60 = vadd.f32 %v5466_v58, %v5083_v31 }
 0x938   :  { %v6466_v4 = vpop.f32.mrf.mxu1 }
 0x939   :  { %v5478_v63 = vadd.f32 %v5674_v59, %v5470_v60 }
 0x93b   :  { %v5480_v3 = vsel %vm5479_vm4, %v5478_v63, -inf }
 0x93c   :  { %5481 = vmax.xlane.f32.xlu0 %v5480_v3 }
 0x9c5   :  { %v5482_v6 = vpop.xlane.xlu0 %5481 }
 0x9c6   :  { %v5483_v30 = vsub.f32 %v5478_v63, %v5482_v6 }
 0x9c8   :  { %v5484_v40 = vmul.f32 1.442695, %v5483_v30 }
 0x9ca   :  { %6598 = vpow2.f32 %v5484_v40 }
 0x9d7   :  { %v6599_v7 = vpop.eup %6598 }
 0x9d8   :  { %v5486_v38 = vsel %vm5479_vm4, %v6599_v7, 0.0 }
 0x9d9   :  { %5487 = vadd.xlane.f32.xlu0 %v5486_v38 }
 0xa62   :  { %v5488_v35 = vpop.xlane.xlu0 %5487 }
 0xa63   :  { %6600 = vrcp.f32 %v5488_v35 }
 0xa70   :  { %v6601_v49 = vpop.eup %6600 }
 0xa71   :  { %v5490_v9 = vmul.f32 %v6601_v49, %v6599_v7 }
 0xa73   :  { %5491 = vst.msk [vmem:[#allocation2] sm:$0x3] %vm5479_vm4, %v5490_v9 }
 0xa74   :  { %6616 = shalt.err (!%p6613_p4)
}
 0xa75   :  { %5501 = dma.vmem_to_hbm [thread:$0]  %s5499_s30, 32, %s7604_s6, [#allocation3]  }
 0xa76   :  { %6625 = dma.done.wait [#allocation3], 32  }
 0xa77   :  { %6626 = vsyncadd [#allocation3], 4294967264 }
 0xa78   :  { %5505 = vsyncpa [#allocation3], 1 }

</bundles_post_ra>
